<compile_context>
chip_gen: v6e
topology: v6e:2x2x1
jax: 0.10.0
libtpu: 0.0.40
codegen_flags: <defaults>
</compile_context>

<pallas_src>
import functools
import math

import jax
import jax.numpy as jnp
from jax import lax
from jax.experimental import pallas as pl
from jax.experimental.pallas import tpu as pltpu

NEG_INF = -1e9  # finite large negative: fully-masked rows give uniform probs instead of NaN
_CONTRACT_LAST = (((1,), (1,)), ((), ()))  # x(M,K) . w(N,K) -> (M,N) without transposing w

_VMEM_LIMIT_CACHE = None


def _vmem_limit():
    """Generation-aware scoped-VMEM limit (~40 MiB on v7x, up to 64 MiB on v5e/v6e)."""
    global _VMEM_LIMIT_CACHE
    if _VMEM_LIMIT_CACHE is None:
        try:
            cap = int(pltpu.get_tpu_info().vmem_capacity_bytes)
        except Exception:
            cap = 128 * 1024 * 1024
        _VMEM_LIMIT_CACHE = int(max(32 * 1024 * 1024,
                                    min(cap - 24 * 1024 * 1024, 64 * 1024 * 1024)))
    return _VMEM_LIMIT_CACHE


def _tile(dim, target, align):
    """Largest tile t <= target with dim % t == 0 and t % align == 0.

    Falls back to the full dimension only if no aligned divisor exists (full-dim blocks are
    always layout-legal); never silently produces a huge unaligned accumulator.
    """
    if dim <= target:
        return dim
    t = (target // align) * align
    while t >= align:
        if dim % t == 0:
            return t
        t -= align
    return dim


def _bf16(x):
    return x.astype(jnp.bfloat16)


# ----------------------- gridded Linear: x @ W^T + b -----------------------
def _linear_kernel(x_ref, w_ref, b_ref, o_ref, acc_ref):
    @pl.when(pl.program_id(2) == 0)
    def _():
        acc_ref[...] = jnp.zeros_like(acc_ref)

    acc_ref[...] += lax.dot_general(
        x_ref[...].astype(jnp.bfloat16), w_ref[...].astype(jnp.bfloat16),
        _CONTRACT_LAST, preferred_element_type=jnp.float32)

    @pl.when(pl.program_id(2) == pl.num_programs(2) - 1)
    def _():
        o_ref[...] = (acc_ref[...] + b_ref[...].astype(jnp.float32)).astype(o_ref.dtype)


def linear(x, w, b, tm=256, tn=512, tk=512):
    M, K = x.shape
    N = w.shape[0]
    tm, tn, tk = _tile(M, tm, 8), _tile(N, tn, 128), _tile(K, tk, 128)
    return pl.pallas_call(
        _linear_kernel,
        out_shape=jax.ShapeDtypeStruct((M, N), jnp.bfloat16),
        grid=(M // tm, N // tn, K // tk),
        in_specs=[
            pl.BlockSpec((tm, tk), lambda i, j, k: (i, k)),
            pl.BlockSpec((tn, tk), lambda i, j, k: (j, k)),
            pl.BlockSpec((1, tn), lambda i, j, k: (0, j)),
        ],
        out_specs=pl.BlockSpec((tm, tn), lambda i, j, k: (i, j)),
        scratch_shapes=[pltpu.VMEM((tm, tn), jnp.float32)],
        compiler_params=pltpu.CompilerParams(
            dimension_semantics=("parallel", "parallel", "arbitrary"),
            vmem_limit_bytes=_vmem_limit()),
    )(x, w, b.reshape(1, N))


# ----------------------- fused Q/K/V projection (one pallas_call, E output axis tiled) -----------------------
def _qkv_kernel(xq_ref, xk_ref, xv_ref, wq_ref, wk_ref, wv_ref,
                bq_ref, bk_ref, bv_ref, qo_ref, ko_ref, vo_ref,
                accq, acck, accv):
    k = pl.program_id(2)

    @pl.when(k == 0)
    def _():
        accq[...] = jnp.zeros_like(accq)
        acck[...] = jnp.zeros_like(acck)
        accv[...] = jnp.zeros_like(accv)

    accq[...] += lax.dot_general(xq_ref[...].astype(jnp.bfloat16), wq_ref[...].astype(jnp.bfloat16),
                                 _CONTRACT_LAST, preferred_element_type=jnp.float32)
    acck[...] += lax.dot_general(xk_ref[...].astype(jnp.bfloat16), wk_ref[...].astype(jnp.bfloat16),
                                 _CONTRACT_LAST, preferred_element_type=jnp.float32)
    accv[...] += lax.dot_general(xv_ref[...].astype(jnp.bfloat16), wv_ref[...].astype(jnp.bfloat16),
                                 _CONTRACT_LAST, preferred_element_type=jnp.float32)

    @pl.when(k == pl.num_programs(2) - 1)
    def _():
        qo_ref[...] = (accq[...] + bq_ref[...].astype(jnp.float32)).astype(qo_ref.dtype)
        ko_ref[...] = (acck[...] + bk_ref[...].astype(jnp.float32)).astype(ko_ref.dtype)
        vo_ref[...] = (accv[...] + bv_ref[...].astype(jnp.float32)).astype(vo_ref.dtype)


def qkv_projection(xq, xk, xv, wq, wk, wv, bq, bk, bv, tm=256, tn=512, tk=512):
    M, K = xq.shape
    E = wq.shape[0]
    tm, tn, tk = _tile(M, tm, 8), _tile(E, tn, 128), _tile(K, tk, 128)
    x_spec = pl.BlockSpec((tm, tk), lambda i, j, k: (i, k))
    w_spec = pl.BlockSpec((tn, tk), lambda i, j, k: (j, k))
    b_spec = pl.BlockSpec((1, tn), lambda i, j, k: (0, j))
    o_spec = pl.BlockSpec((tm, tn), lambda i, j, k: (i, j))
    o_shape = jax.ShapeDtypeStruct((M, E), jnp.bfloat16)
    return pl.pallas_call(
        _qkv_kernel,
        out_shape=(o_shape, o_shape, o_shape),
        grid=(M // tm, E // tn, K // tk),
        in_specs=[x_spec, x_spec, x_spec, w_spec, w_spec, w_spec, b_spec, b_spec, b_spec],
        out_specs=(o_spec, o_spec, o_spec),
        scratch_shapes=[pltpu.VMEM((tm, tn), jnp.float32) for _ in range(3)],
        compiler_params=pltpu.CompilerParams(
            dimension_semantics=("parallel", "parallel", "arbitrary"),
            vmem_limit_bytes=_vmem_limit()),
    )(xq, xk, xv, wq, wk, wv, bq.reshape(1, E), bk.reshape(1, E), bv.reshape(1, E))


# ----------------------- fused matmul + bias + residual + LayerNorm -----------------------
def _matmul_res_ln_kernel(x_ref, w_ref, b_ref, r_ref, g_ref, bt_ref, o_ref, acc_ref, *, eps):
    @pl.when(pl.program_id(1) == 0)
    def _():
        acc_ref[...] = jnp.zeros_like(acc_ref)

    acc_ref[...] += lax.dot_general(x_ref[...].astype(jnp.bfloat16), w_ref[...].astype(jnp.bfloat16),
                                    _CONTRACT_LAST, preferred_element_type=jnp.float32)

    @pl.when(pl.program_id(1) == pl.num_programs(1) - 1)
    def _():
        z = acc_ref[...] + b_ref[...].astype(jnp.float32) + r_ref[...].astype(jnp.float32)
        mean = jnp.mean(z, axis=-1, keepdims=True)
        var = jnp.mean((z - mean) ** 2, axis=-1, keepdims=True)
        zn = (z - mean) * lax.rsqrt(var + eps)
        o_ref[...] = (zn * g_ref[...].astype(jnp.float32)
                      + bt_ref[...].astype(jnp.float32)).astype(o_ref.dtype)


def matmul_residual_layernorm(x, w, b, residual, gamma, beta, eps=1e-5,
                              tm=256, tk=512, out_dtype=jnp.bfloat16):
    M, K = x.shape
    N = w.shape[0]
    tm, tk = _tile(M, tm, 8), _tile(K, tk, 128)
    return pl.pallas_call(
        functools.partial(_matmul_res_ln_kernel, eps=eps),
        out_shape=jax.ShapeDtypeStruct((M, N), out_dtype),
        grid=(M // tm, K // tk),
        in_specs=[
            pl.BlockSpec((tm, tk), lambda i, k: (i, k)),
            pl.BlockSpec((N, tk), lambda i, k: (0, k)),
            pl.BlockSpec((1, N), lambda i, k: (0, 0)),
            pl.BlockSpec((tm, N), lambda i, k: (i, 0)),
            pl.BlockSpec((1, N), lambda i, k: (0, 0)),
            pl.BlockSpec((1, N), lambda i, k: (0, 0)),
        ],
        out_specs=pl.BlockSpec((tm, N), lambda i, k: (i, 0)),
        scratch_shapes=[pltpu.VMEM((tm, N), jnp.float32)],
        compiler_params=pltpu.CompilerParams(
            dimension_semantics=("parallel", "arbitrary"),
            vmem_limit_bytes=_vmem_limit()),
    )(x, w, b.reshape(1, N), residual, gamma.reshape(1, N), beta.reshape(1, N))


# ----------------------- fused FFN: Linear+ReLU+Linear + residual + LayerNorm -----------------------
def _ffn_kernel(x_ref, w1_ref, b1_ref, w2_ref, b2_ref, r_ref, g_ref, bt_ref, o_ref, hacc_ref, *, eps):
    @pl.when(pl.program_id(1) == 0)
    def _():
        hacc_ref[...] = jnp.zeros_like(hacc_ref)

    hacc_ref[...] += lax.dot_general(x_ref[...].astype(jnp.bfloat16), w1_ref[...].astype(jnp.bfloat16),
                                     _CONTRACT_LAST, preferred_element_type=jnp.float32)

    @pl.when(pl.program_id(1) == pl.num_programs(1) - 1)
    def _():
        hidden = jnp.maximum(hacc_ref[...] + b1_ref[...].astype(jnp.float32), 0.0)
        z = lax.dot_general(hidden.astype(jnp.bfloat16), w2_ref[...].astype(jnp.bfloat16),
                            _CONTRACT_LAST, preferred_element_type=jnp.float32)
        z = z + b2_ref[...].astype(jnp.float32) + r_ref[...].astype(jnp.float32)
        mean = jnp.mean(z, axis=-1, keepdims=True)
        var = jnp.mean((z - mean) ** 2, axis=-1, keepdims=True)
        zn = (z - mean) * lax.rsqrt(var + eps)
        o_ref[...] = (zn * g_ref[...].astype(jnp.float32)
                      + bt_ref[...].astype(jnp.float32)).astype(o_ref.dtype)


def ffn_residual_layernorm(x, w1, b1, w2, b2, gamma, beta, eps=1e-5, tm=256, tk=512):
    """relu(x @ W1^T + b1) @ W2^T + b2, + residual(x), LayerNorm — hidden stays in VMEM."""
    M, E = x.shape
    F = w1.shape[0]
    tm, tk = _tile(M, tm, 8), _tile(E, tk, 128)
    return pl.pallas_call(
        functools.partial(_ffn_kernel, eps=eps),
        out_shape=jax.ShapeDtypeStruct((M, E), jnp.float32),
        grid=(M // tm, E // tk),
        in_specs=[
            pl.BlockSpec((tm, tk), lambda i, k: (i, k)),   # x tile for FFN1 contraction
            pl.BlockSpec((F, tk), lambda i, k: (0, k)),    # W1 tile
            pl.BlockSpec((1, F), lambda i, k: (0, 0)),     # b1
            pl.BlockSpec((E, F), lambda i, k: (0, 0)),     # W2 (constant index -> fetched once)
            pl.BlockSpec((1, E), lambda i, k: (0, 0)),     # b2
            pl.BlockSpec((tm, E), lambda i, k: (i, 0)),    # residual (= x, full row)
            pl.BlockSpec((1, E), lambda i, k: (0, 0)),     # gamma
            pl.BlockSpec((1, E), lambda i, k: (0, 0)),     # beta
        ],
        out_specs=pl.BlockSpec((tm, E), lambda i, k: (i, 0)),
        scratch_shapes=[pltpu.VMEM((tm, F), jnp.float32)],
        compiler_params=pltpu.CompilerParams(
            dimension_semantics=("parallel", "arbitrary"),
            vmem_limit_bytes=_vmem_limit()),
    )(x, w1, b1.reshape(1, F), w2, b2.reshape(1, E), x, gamma.reshape(1, E), beta.reshape(1, E))


# ----------------------- multi-head attention core, gridded over (batch, head) -----------------------
def _mha_kernel(q_ref, k_ref, v_ref, am_ref, pm_ref, *out_refs, n_heads, scale, need_weights):
    # q/k/v blocks: (1, 1, L/S, hd) lane-dense head tiles; am: (L, S) 0/1; pm: (1, 1, S) 0/1
    if need_weights:
        o_ref, w_ref = out_refs
    else:
        (o_ref,) = out_refs
    h = pl.program_id(1)

    q = q_ref[0, 0]                       # (L, hd) bf16
    k = k_ref[0, 0]                       # (S, hd) bf16
    v = v_ref[0, 0]                       # (S, hd) bf16

    # single additive bias tile (built once per step, reused for score offset)
    bias = jnp.where((am_ref[...] + pm_ref[0]) > 0.0, NEG_INF, 0.0)

    s = lax.dot_general(q, k, _CONTRACT_LAST, preferred_element_type=jnp.float32)
    s = s * scale + bias
    m = jnp.max(s, axis=-1, keepdims=True)
    e = jnp.exp(s - m)
    p = e * pl.reciprocal(jnp.sum(e, axis=-1, keepdims=True), approx=True)

    # per-(batch, head) lane-dense context store
    o_ref[0, 0] = jnp.dot(p.astype(jnp.bfloat16), v,
                          preferred_element_type=jnp.float32).astype(o_ref.dtype)

    if need_weights:
        # head-averaged weights accumulate into the resident output block (head axis "arbitrary")
        @pl.when(h == 0)
        def _():
            w_ref[...] = jnp.zeros_like(w_ref)
        w_ref[0] += p * (1.0 / n_heads)


def attention_core(q, k, v, attn_mask_f, pad_mask_f, n_heads, need_weights=True):
    # q/k/v: (B, nH, L/S, hd)
    B, nH, L, hd = q.shape
    S = k.shape[2]
    out_shapes = [jax.ShapeDtypeStruct((B, nH, L, hd), jnp.bfloat16)]
    out_specs = [pl.BlockSpec((1, 1, L, hd), lambda b, h: (b, h, 0, 0))]
    if need_weights:
        out_shapes.append(jax.ShapeDtypeStruct((B, L, S), jnp.float32))
        out_specs.append(pl.BlockSpec((1, L, S), lambda b, h: (b, 0, 0)))
    return pl.pallas_call(
        functools.partial(_mha_kernel, n_heads=n_heads, scale=1.0 / math.sqrt(hd),
                          need_weights=need_weights),
        out_shape=tuple(out_shapes),
        grid=(B, nH),
        in_specs=[
            pl.BlockSpec((1, 1, L, hd), lambda b, h: (b, h, 0, 0)),
            pl.BlockSpec((1, 1, S, hd), lambda b, h: (b, h, 0, 0)),
            pl.BlockSpec((1, 1, S, hd), lambda b, h: (b, h, 0, 0)),
            pl.BlockSpec((L, S), lambda b, h: (0, 0)),
            pl.BlockSpec((1, 1, S), lambda b, h: (b, 0, 0)),
        ],
        out_specs=tuple(out_specs),
        compiler_params=pltpu.CompilerParams(
            dimension_semantics=("parallel", "arbitrary"),
            vmem_limit_bytes=_vmem_limit()),
    )(q, k, v, attn_mask_f, pad_mask_f)


# ----------------------- full TransformerBlock forward -----------------------
def transformer_block_forward(params, query, key, value, tgt_padding_mask,
                              tgt_attention_mask, *, n_heads, need_weights=True):
    B, L, E = query.shape
    S = key.shape[1]
    hd = E // n_heads

    q_flat = query.reshape(B * L, E)
    k_flat = key.reshape(B * S, E)
    v_flat = value.reshape(B * S, E)

    wq, wk, wv = _bf16(params["w_q"]), _bf16(params["w_k"]), _bf16(params["w_v"])

    # fused Q/K/V in-projection when shapes allow (self-attention style), else per-tensor linears
    if key.shape == query.shape and value.shape == query.shape:
        q_p, k_p, v_p = qkv_projection(q_flat, k_flat, v_flat, wq, wk, wv,
                                       params["b_q"], params["b_k"], params["b_v"])
    else:
        q_p = linear(q_flat, wq, params["b_q"])
        k_p = linear(k_flat, wk, params["b_k"])
        v_p = linear(v_flat, wv, params["b_v"])

    # split heads: (B, nH, seq, hd) so attention BlockSpecs deliver lane-dense head tiles
    q_h = q_p.reshape(B, L, n_heads, hd).transpose(0, 2, 1, 3)
    k_h = k_p.reshape(B, S, n_heads, hd).transpose(0, 2, 1, 3)
    v_h = v_p.reshape(B, S, n_heads, hd).transpose(0, 2, 1, 3)

    # bool masks passed as tiny 0/1 f32 tensors; the additive bias is built inside the kernel
    attn_mask_f = tgt_attention_mask.astype(jnp.float32)                 # (L, S)
    pad_mask_f = tgt_padding_mask.astype(jnp.float32).reshape(B, 1, S)   # (B, 1, S)

    attn_out = attention_core(q_h, k_h, v_h, attn_mask_f, pad_mask_f, n_heads, need_weights)
    ctx_h = attn_out[0]                                                  # (B, nH, L, hd)
    attn_weights = attn_out[1] if need_weights else None
    ctx = ctx_h.transpose(0, 2, 1, 3).reshape(B * L, E)

    # out_proj + residual + LayerNorm1 fused (dropout_1 is identity in eval mode)
    out1 = matmul_residual_layernorm(ctx, _bf16(params["w_o"]), params["b_o"],
                                     q_flat, params["ln1_g"], params["ln1_b"])

    # feed-forward fused: Linear(E,2048)+ReLU+Linear(2048,E) + residual + LayerNorm2
    # (hidden (M, 2048) activation never leaves VMEM; dropout_2 is identity in eval mode)
    out2 = ffn_residual_layernorm(out1, _bf16(params["w_ff1"]), params["b_ff1"],
                                  _bf16(params["w_ff2"]), params["b_ff2"],
                                  params["ln2_g"], params["ln2_b"])

    return out2.reshape(B, L, E), attn_weights


def init_params(key, embedding_size, ff_dim=2048):
    ks = jax.random.split(key, 12)
    E = embedding_size
    sc = 0.02
    return {
        "w_q": sc * jax.random.normal(ks[0], (E, E), jnp.float32),
        "b_q": sc * jax.random.normal(ks[1], (E,), jnp.float32),
        "w_k": sc * jax.random.normal(ks[2], (E, E), jnp.float32),
        "b_k": sc * jax.random.normal(ks[3], (E,), jnp.float32),
        "w_v": sc * jax.random.normal(ks[4], (E, E), jnp.float32),
        "b_v": sc * jax.random.normal(ks[5], (E,), jnp.float32),
        "w_o": sc * jax.random.normal(ks[6], (E, E), jnp.float32),
        "b_o": sc * jax.random.normal(ks[7], (E,), jnp.float32),
        "ln1_g": jnp.ones((E,), jnp.float32),
        "ln1_b": jnp.zeros((E,), jnp.float32),
        "ln2_g": jnp.ones((E,), jnp.float32),
        "ln2_b": jnp.zeros((E,), jnp.float32),
        "w_ff1": sc * jax.random.normal(ks[8], (ff_dim, E), jnp.float32),
        "b_ff1": sc * jax.random.normal(ks[9], (ff_dim,), jnp.float32),
        "w_ff2": sc * jax.random.normal(ks[10], (E, ff_dim), jnp.float32),
        "b_ff2": sc * jax.random.normal(ks[11], (E,), jnp.float32),
    }


if __name__ == "__main__":
    B, L, E, nH = 2, 8, 32, 4

    root = jax.random.PRNGKey(0)
    pkey, qkey, kkey, vkey = jax.random.split(root, 4)
    params = init_params(pkey, E)

    query = jax.random.normal(qkey, (B, L, E), jnp.float32)
    key_in = jax.random.normal(kkey, (B, L, E), jnp.float32)
    value = jax.random.normal(vkey, (B, L, E), jnp.float32)

    # causal attention mask (True = masked) and key padding mask (True = pad), PyTorch semantics
    tgt_attention_mask = jnp.triu(jnp.ones((L, L), dtype=bool), k=1)
    tgt_padding_mask = jnp.zeros((B, L), dtype=bool).at[1, -2:].set(True)

    fwd = jax.jit(transformer_block_forward, static_argnames=("n_heads", "need_weights"))
    out, attn_w = fwd(params, query, key_in, value, tgt_padding_mask,
                      tgt_attention_mask, n_heads=nH)
    jax.block_until_ready((out, attn_w))
    assert out.shape == (B, L, E) and attn_w.shape == (B, L, L)
    assert bool(jnp.all(jnp.isfinite(out))) and bool(jnp.all(jnp.isfinite(attn_w)))
    print("KERNEL_OK")
</pallas_src>

<mosaic_0001>
module attributes {stable_mosaic.version = 11 : i64} {
  func.func @_qkv_kernel(%arg0: i32, %arg1: i32, %arg2: i32, %arg3: memref<16x32xf32, #tpu.memory_space<vmem>>, %arg4: memref<16x32xf32, #tpu.memory_space<vmem>>, %arg5: memref<16x32xf32, #tpu.memory_space<vmem>>, %arg6: memref<32x32xbf16, #tpu.memory_space<vmem>>, %arg7: memref<32x32xbf16, #tpu.memory_space<vmem>>, %arg8: memref<32x32xbf16, #tpu.memory_space<vmem>>, %arg9: memref<1x32xf32, #tpu.memory_space<vmem>>, %arg10: memref<1x32xf32, #tpu.memory_space<vmem>>, %arg11: memref<1x32xf32, #tpu.memory_space<vmem>>, %arg12: memref<16x32xbf16, #tpu.memory_space<vmem>>, %arg13: memref<16x32xbf16, #tpu.memory_space<vmem>>, %arg14: memref<16x32xbf16, #tpu.memory_space<vmem>>, %arg15: memref<16x32xf32, #tpu.memory_space<vmem>>, %arg16: memref<16x32xf32, #tpu.memory_space<vmem>>, %arg17: memref<16x32xf32, #tpu.memory_space<vmem>>) attributes {dimension_semantics = [#tpu.dimension_semantics<parallel>, #tpu.dimension_semantics<parallel>, #tpu.dimension_semantics<arbitrary>], iteration_bounds = array<i64: 1, 1, 1>, scalar_prefetch = 0 : i64, scratch_operands = 3 : i64, tpu.core_type = #tpu.core_type<tc>, window_params = [{transform_indices = @transform_0, window_bounds = array<i64: 16, 32>}, {transform_indices = @transform_1, window_bounds = array<i64: 16, 32>}, {transform_indices = @transform_2, window_bounds = array<i64: 16, 32>}, {transform_indices = @transform_3, window_bounds = array<i64: 32, 32>}, {transform_indices = @transform_4, window_bounds = array<i64: 32, 32>}, {transform_indices = @transform_5, window_bounds = array<i64: 32, 32>}, {transform_indices = @transform_6, window_bounds = array<i64: 1, 32>}, {transform_indices = @transform_7, window_bounds = array<i64: 1, 32>}, {transform_indices = @transform_8, window_bounds = array<i64: 1, 32>}, {transform_indices = @transform_9, window_bounds = array<i64: 16, 32>}, {transform_indices = @transform_10, window_bounds = array<i64: 16, 32>}, {transform_indices = @transform_11, window_bounds = array<i64: 16, 32>}]} {
    %c0_i32 = arith.constant 0 : i32
    %0 = arith.cmpi eq, %arg2, %c0_i32 : i32
    %1 = arith.extui %0 : i1 to i32
    %c0_i32_0 = arith.constant 0 : i32
    %2 = arith.cmpi ne, %1, %c0_i32_0 : i32
    scf.if %2 {
      %cst_28 = arith.constant 0.000000e+00 : f32
      %27 = vector.broadcast %cst_28 : f32 to vector<16x32xf32>
      %c0_29 = arith.constant 0 : index
      %c0_30 = arith.constant 0 : index
      %28 = vector.load %arg15[%c0_29, %c0_30] : memref<16x32xf32, #tpu.memory_space<vmem>>, vector<16x32xf32>
      tpu.vector_store %arg15[%c0_29, %c0_30], %27 {strides = array<i32>} : memref<16x32xf32, #tpu.memory_space<vmem>>, vector<16x32xf32>,
      %cst_31 = arith.constant 0.000000e+00 : f32
      %29 = vector.broadcast %cst_31 : f32 to vector<16x32xf32>
      %c0_32 = arith.constant 0 : index
      %c0_33 = arith.constant 0 : index
      %30 = vector.load %arg16[%c0_32, %c0_33] : memref<16x32xf32, #tpu.memory_space<vmem>>, vector<16x32xf32>
      tpu.vector_store %arg16[%c0_32, %c0_33], %29 {strides = array<i32>} : memref<16x32xf32, #tpu.memory_space<vmem>>, vector<16x32xf32>,
      %cst_34 = arith.constant 0.000000e+00 : f32
      %31 = vector.broadcast %cst_34 : f32 to vector<16x32xf32>
      %c0_35 = arith.constant 0 : index
      %c0_36 = arith.constant 0 : index
      %32 = vector.load %arg17[%c0_35, %c0_36] : memref<16x32xf32, #tpu.memory_space<vmem>>, vector<16x32xf32>
      tpu.vector_store %arg17[%c0_35, %c0_36], %31 {strides = array<i32>} : memref<16x32xf32, #tpu.memory_space<vmem>>, vector<16x32xf32>,
    } else {
    }
    %c0 = arith.constant 0 : index
    %c0_1 = arith.constant 0 : index
    %3 = vector.load %arg15[%c0, %c0_1] : memref<16x32xf32, #tpu.memory_space<vmem>>, vector<16x32xf32>
    %c0_2 = arith.constant 0 : index
    %c0_3 = arith.constant 0 : index
    %4 = vector.load %arg3[%c0_2, %c0_3] : memref<16x32xf32, #tpu.memory_space<vmem>>, vector<16x32xf32>
    %5 = arith.truncf %4 : vector<16x32xf32> to vector<16x32xbf16>
    %c0_4 = arith.constant 0 : index
    %c0_5 = arith.constant 0 : index
    %6 = vector.load %arg6[%c0_4, %c0_5] : memref<32x32xbf16, #tpu.memory_space<vmem>>, vector<32x32xbf16>
    %cst = arith.constant dense<0.000000e+00> : vector<16x32xf32>
    %7 = tpu.matmul %5, %6, %cst {dimension_numbers = #tpu.dot_dimension_numbers<[1], [1], [0], [0], [0, 0, 1, 0], [], []>} : vector<16x32xbf16>, vector<32x32xbf16>, vector<16x32xf32> -> vector<16x32xf32>
    %8 = arith.addf %3, %7 : vector<16x32xf32>
    %c0_6 = arith.constant 0 : index
    %c0_7 = arith.constant 0 : index
    %9 = vector.load %arg15[%c0_6, %c0_7] : memref<16x32xf32, #tpu.memory_space<vmem>>, vector<16x32xf32>
    tpu.vector_store %arg15[%c0_6, %c0_7], %8 {strides = array<i32>} : memref<16x32xf32, #tpu.memory_space<vmem>>, vector<16x32xf32>,
    %c0_8 = arith.constant 0 : index
    %c0_9 = arith.constant 0 : index
    %10 = vector.load %arg16[%c0_8, %c0_9] : memref<16x32xf32, #tpu.memory_space<vmem>>, vector<16x32xf32>
    %c0_10 = arith.constant 0 : index
    %c0_11 = arith.constant 0 : index
    %11 = vector.load %arg4[%c0_10, %c0_11] : memref<16x32xf32, #tpu.memory_space<vmem>>, vector<16x32xf32>
    %12 = arith.truncf %11 : vector<16x32xf32> to vector<16x32xbf16>
    %c0_12 = arith.constant 0 : index
    %c0_13 = arith.constant 0 : index
    %13 = vector.load %arg7[%c0_12, %c0_13] : memref<32x32xbf16, #tpu.memory_space<vmem>>, vector<32x32xbf16>
    %cst_14 = arith.constant dense<0.000000e+00> : vector<16x32xf32>
    %14 = tpu.matmul %12, %13, %cst_14 {dimension_numbers = #tpu.dot_dimension_numbers<[1], [1], [0], [0], [0, 0, 1, 0], [], []>} : vector<16x32xbf16>, vector<32x32xbf16>, vector<16x32xf32> -> vector<16x32xf32>
    %15 = arith.addf %10, %14 : vector<16x32xf32>
    %c0_15 = arith.constant 0 : index
    %c0_16 = arith.constant 0 : index
    %16 = vector.load %arg16[%c0_15, %c0_16] : memref<16x32xf32, #tpu.memory_space<vmem>>, vector<16x32xf32>
    tpu.vector_store %arg16[%c0_15, %c0_16], %15 {strides = array<i32>} : memref<16x32xf32, #tpu.memory_space<vmem>>, vector<16x32xf32>,
    %c0_17 = arith.constant 0 : index
    %c0_18 = arith.constant 0 : index
    %17 = vector.load %arg17[%c0_17, %c0_18] : memref<16x32xf32, #tpu.memory_space<vmem>>, vector<16x32xf32>
    %c0_19 = arith.constant 0 : index
    %c0_20 = arith.constant 0 : index
    %18 = vector.load %arg5[%c0_19, %c0_20] : memref<16x32xf32, #tpu.memory_space<vmem>>, vector<16x32xf32>
    %19 = arith.truncf %18 : vector<16x32xf32> to vector<16x32xbf16>
    %c0_21 = arith.constant 0 : index
    %c0_22 = arith.constant 0 : index
    %20 = vector.load %arg8[%c0_21, %c0_22] : memref<32x32xbf16, #tpu.memory_space<vmem>>, vector<32x32xbf16>
    %cst_23 = arith.constant dense<0.000000e+00> : vector<16x32xf32>
    %21 = tpu.matmul %19, %20, %cst_23 {dimension_numbers = #tpu.dot_dimension_numbers<[1], [1], [0], [0], [0, 0, 1, 0], [], []>} : vector<16x32xbf16>, vector<32x32xbf16>, vector<16x32xf32> -> vector<16x32xf32>
    %22 = arith.addf %17, %21 : vector<16x32xf32>
    %c0_24 = arith.constant 0 : index
    %c0_25 = arith.constant 0 : index
    %23 = vector.load %arg17[%c0_24, %c0_25] : memref<16x32xf32, #tpu.memory_space<vmem>>, vector<16x32xf32>
    tpu.vector_store %arg17[%c0_24, %c0_25], %22 {strides = array<i32>} : memref<16x32xf32, #tpu.memory_space<vmem>>, vector<16x32xf32>,
    %c0_i32_26 = arith.constant 0 : i32
    %24 = arith.cmpi eq, %arg2, %c0_i32_26 : i32
    %25 = arith.extui %24 : i1 to i32
    %c0_i32_27 = arith.constant 0 : i32
    %26 = arith.cmpi ne, %25, %c0_i32_27 : i32
    scf.if %26 {
      %c0_28 = arith.constant 0 : index
      %c0_29 = arith.constant 0 : index
      %27 = vector.load %arg15[%c0_28, %c0_29] : memref<16x32xf32, #tpu.memory_space<vmem>>, vector<16x32xf32>
      %c0_30 = arith.constant 0 : index
      %c0_31 = arith.constant 0 : index
      %28 = vector.load %arg9[%c0_30, %c0_31] : memref<1x32xf32, #tpu.memory_space<vmem>>, vector<1x32xf32>
      %29 = vector.broadcast %28 : vector<1x32xf32> to vector<16x32xf32>
      %30 = arith.addf %27, %29 : vector<16x32xf32>
      %31 = arith.truncf %30 : vector<16x32xf32> to vector<16x32xbf16>
      %c0_32 = arith.constant 0 : index
      %c0_33 = arith.constant 0 : index
      %32 = vector.load %arg12[%c0_32, %c0_33] : memref<16x32xbf16, #tpu.memory_space<vmem>>, vector<16x32xbf16>
      tpu.vector_store %arg12[%c0_32, %c0_33], %31 {strides = array<i32>} : memref<16x32xbf16, #tpu.memory_space<vmem>>, vector<16x32xbf16>,
      %c0_34 = arith.constant 0 : index
      %c0_35 = arith.constant 0 : index
      %33 = vector.load %arg16[%c0_34, %c0_35] : memref<16x32xf32, #tpu.memory_space<vmem>>, vector<16x32xf32>
      %c0_36 = arith.constant 0 : index
      %c0_37 = arith.constant 0 : index
      %34 = vector.load %arg10[%c0_36, %c0_37] : memref<1x32xf32, #tpu.memory_space<vmem>>, vector<1x32xf32>
      %35 = vector.broadcast %34 : vector<1x32xf32> to vector<16x32xf32>
      %36 = arith.addf %33, %35 : vector<16x32xf32>
      %37 = arith.truncf %36 : vector<16x32xf32> to vector<16x32xbf16>
      %c0_38 = arith.constant 0 : index
      %c0_39 = arith.constant 0 : index
      %38 = vector.load %arg13[%c0_38, %c0_39] : memref<16x32xbf16, #tpu.memory_space<vmem>>, vector<16x32xbf16>
      tpu.vector_store %arg13[%c0_38, %c0_39], %37 {strides = array<i32>} : memref<16x32xbf16, #tpu.memory_space<vmem>>, vector<16x32xbf16>,
      %c0_40 = arith.constant 0 : index
      %c0_41 = arith.constant 0 : index
      %39 = vector.load %arg17[%c0_40, %c0_41] : memref<16x32xf32, #tpu.memory_space<vmem>>, vector<16x32xf32>
      %c0_42 = arith.constant 0 : index
      %c0_43 = arith.constant 0 : index
      %40 = vector.load %arg11[%c0_42, %c0_43] : memref<1x32xf32, #tpu.memory_space<vmem>>, vector<1x32xf32>
      %41 = vector.broadcast %40 : vector<1x32xf32> to vector<16x32xf32>
      %42 = arith.addf %39, %41 : vector<16x32xf32>
      %43 = arith.truncf %42 : vector<16x32xf32> to vector<16x32xbf16>
      %c0_44 = arith.constant 0 : index
      %c0_45 = arith.constant 0 : index
      %44 = vector.load %arg14[%c0_44, %c0_45] : memref<16x32xbf16, #tpu.memory_space<vmem>>, vector<16x32xbf16>
      tpu.vector_store %arg14[%c0_44, %c0_45], %43 {strides = array<i32>} : memref<16x32xbf16, #tpu.memory_space<vmem>>, vector<16x32xbf16>,
    } else {
    }
    return
  }
  func.func @transform_0(%arg0: i32, %arg1: i32, %arg2: i32) -> (i32, i32) {
    %c0_i32 = arith.constant 0 : i32
    return %arg0, %arg2 : i32, i32
  }
  func.func @transform_1(%arg0: i32, %arg1: i32, %arg2: i32) -> (i32, i32) {
    %c0_i32 = arith.constant 0 : i32
    return %arg0, %arg2 : i32, i32
  }
  func.func @transform_2(%arg0: i32, %arg1: i32, %arg2: i32) -> (i32, i32) {
    %c0_i32 = arith.constant 0 : i32
    return %arg0, %arg2 : i32, i32
  }
  func.func @transform_3(%arg0: i32, %arg1: i32, %arg2: i32) -> (i32, i32) {
    %c0_i32 = arith.constant 0 : i32
    return %arg1, %arg2 : i32, i32
  }
  func.func @transform_4(%arg0: i32, %arg1: i32, %arg2: i32) -> (i32, i32) {
    %c0_i32 = arith.constant 0 : i32
    return %arg1, %arg2 : i32, i32
  }
  func.func @transform_5(%arg0: i32, %arg1: i32, %arg2: i32) -> (i32, i32) {
    %c0_i32 = arith.constant 0 : i32
    return %arg1, %arg2 : i32, i32
  }
  func.func @transform_6(%arg0: i32, %arg1: i32, %arg2: i32) -> (i32, i32) {
    %c0_i32 = arith.constant 0 : i32
    %c0_i32_0 = arith.constant 0 : i32
    return %c0_i32, %arg1 : i32, i32
  }
  func.func @transform_7(%arg0: i32, %arg1: i32, %arg2: i32) -> (i32, i32) {
    %c0_i32 = arith.constant 0 : i32
    %c0_i32_0 = arith.constant 0 : i32
    return %c0_i32, %arg1 : i32, i32
  }
  func.func @transform_8(%arg0: i32, %arg1: i32, %arg2: i32) -> (i32, i32) {
    %c0_i32 = arith.constant 0 : i32
    %c0_i32_0 = arith.constant 0 : i32
    return %c0_i32, %arg1 : i32, i32
  }
  func.func @transform_9(%arg0: i32, %arg1: i32, %arg2: i32) -> (i32, i32) {
    %c0_i32 = arith.constant 0 : i32
    return %arg0, %arg1 : i32, i32
  }
  func.func @transform_10(%arg0: i32, %arg1: i32, %arg2: i32) -> (i32, i32) {
    %c0_i32 = arith.constant 0 : i32
    return %arg0, %arg1 : i32, i32
  }
  func.func @transform_11(%arg0: i32, %arg1: i32, %arg2: i32) -> (i32, i32) {
    %c0_i32 = arith.constant 0 : i32
    return %arg0, %arg1 : i32, i32
  }
}

module attributes {stable_mosaic.version = 11 : i64} {
  func.func @_matmul_res_ln_kernel(%arg0: i32, %arg1: i32, %arg2: memref<16x32xbf16, #tpu.memory_space<vmem>>, %arg3: memref<32x32xbf16, #tpu.memory_space<vmem>>, %arg4: memref<1x32xf32, #tpu.memory_space<vmem>>, %arg5: memref<16x32xf32, #tpu.memory_space<vmem>>, %arg6: memref<1x32xf32, #tpu.memory_space<vmem>>, %arg7: memref<1x32xf32, #tpu.memory_space<vmem>>, %arg8: memref<16x32xbf16, #tpu.memory_space<vmem>>, %arg9: memref<16x32xf32, #tpu.memory_space<vmem>>) attributes {dimension_semantics = [#tpu.dimension_semantics<parallel>, #tpu.dimension_semantics<arbitrary>], iteration_bounds = array<i64: 1, 1>, scalar_prefetch = 0 : i64, scratch_operands = 1 : i64, tpu.core_type = #tpu.core_type<tc>, window_params = [{transform_indices = @transform_0, window_bounds = array<i64: 16, 32>}, {transform_indices = @transform_1, window_bounds = array<i64: 32, 32>}, {pipeline_mode = #tpu.pipeline_mode<synchronous>, transform_indices = @transform_2, window_bounds = array<i64: 1, 32>}, {transform_indices = @transform_3, window_bounds = array<i64: 16, 32>}, {pipeline_mode = #tpu.pipeline_mode<synchronous>, transform_indices = @transform_4, window_bounds = array<i64: 1, 32>}, {pipeline_mode = #tpu.pipeline_mode<synchronous>, transform_indices = @transform_5, window_bounds = array<i64: 1, 32>}, {transform_indices = @transform_6, window_bounds = array<i64: 16, 32>}]} {
    %c0_i32 = arith.constant 0 : i32
    %0 = arith.cmpi eq, %arg1, %c0_i32 : i32
    %1 = arith.extui %0 : i1 to i32
    %c0_i32_0 = arith.constant 0 : i32
    %2 = arith.cmpi ne, %1, %c0_i32_0 : i32
    scf.if %2 {
      %cst_10 = arith.constant 0.000000e+00 : f32
      %12 = vector.broadcast %cst_10 : f32 to vector<16x32xf32>
      %c0_11 = arith.constant 0 : index
      %c0_12 = arith.constant 0 : index
      %13 = vector.load %arg9[%c0_11, %c0_12] : memref<16x32xf32, #tpu.memory_space<vmem>>, vector<16x32xf32>
      tpu.vector_store %arg9[%c0_11, %c0_12], %12 {strides = array<i32>} : memref<16x32xf32, #tpu.memory_space<vmem>>, vector<16x32xf32>,
    } else {
    }
    %c0 = arith.constant 0 : index
    %c0_1 = arith.constant 0 : index
    %3 = vector.load %arg9[%c0, %c0_1] : memref<16x32xf32, #tpu.memory_space<vmem>>, vector<16x32xf32>
    %c0_2 = arith.constant 0 : index
    %c0_3 = arith.constant 0 : index
    %4 = vector.load %arg2[%c0_2, %c0_3] : memref<16x32xbf16, #tpu.memory_space<vmem>>, vector<16x32xbf16>
    %c0_4 = arith.constant 0 : index
    %c0_5 = arith.constant 0 : index
    %5 = vector.load %arg3[%c0_4, %c0_5] : memref<32x32xbf16, #tpu.memory_space<vmem>>, vector<32x32xbf16>
    %cst = arith.constant dense<0.000000e+00> : vector<16x32xf32>
    %6 = tpu.matmul %4, %5, %cst {dimension_numbers = #tpu.dot_dimension_numbers<[1], [1], [0], [0], [0, 0, 1, 0], [], []>} : vector<16x32xbf16>, vector<32x32xbf16>, vector<16x32xf32> -> vector<16x32xf32>
    %7 = arith.addf %3, %6 : vector<16x32xf32>
    %c0_6 = arith.constant 0 : index
    %c0_7 = arith.constant 0 : index
    %8 = vector.load %arg9[%c0_6, %c0_7] : memref<16x32xf32, #tpu.memory_space<vmem>>, vector<16x32xf32>
    tpu.vector_store %arg9[%c0_6, %c0_7], %7 {strides = array<i32>} : memref<16x32xf32, #tpu.memory_space<vmem>>, vector<16x32xf32>,
    %c0_i32_8 = arith.constant 0 : i32
    %9 = arith.cmpi eq, %arg1, %c0_i32_8 : i32
    %10 = arith.extui %9 : i1 to i32
    %c0_i32_9 = arith.constant 0 : i32
    %11 = arith.cmpi ne, %10, %c0_i32_9 : i32
    scf.if %11 {
      %c0_10 = arith.constant 0 : index
      %c0_11 = arith.constant 0 : index
      %12 = vector.load %arg9[%c0_10, %c0_11] : memref<16x32xf32, #tpu.memory_space<vmem>>, vector<16x32xf32>
      %c0_12 = arith.constant 0 : index
      %c0_13 = arith.constant 0 : index
      %13 = vector.load %arg4[%c0_12, %c0_13] : memref<1x32xf32, #tpu.memory_space<vmem>>, vector<1x32xf32>
      %14 = vector.broadcast %13 : vector<1x32xf32> to vector<16x32xf32>
      %15 = arith.addf %12, %14 : vector<16x32xf32>
      %c0_14 = arith.constant 0 : index
      %c0_15 = arith.constant 0 : index
      %16 = vector.load %arg5[%c0_14, %c0_15] : memref<16x32xf32, #tpu.memory_space<vmem>>, vector<16x32xf32>
      %17 = arith.addf %15, %16 : vector<16x32xf32>
      %cst_16 = arith.constant dense<0.000000e+00> : vector<16xf32>
      %18 = vector.multi_reduction <add>, %17, %cst_16 [1] : vector<16x32xf32> to vector<16xf32>
      %19 = vector.shape_cast %18 : vector<16xf32> to vector<16x1xf32>
      %cst_17 = arith.constant 3.200000e+01 : f32
      %20 = vector.broadcast %cst_17 : f32 to vector<16x1xf32>
      %21 = arith.divf %19, %20 : vector<16x1xf32>
      %22 = vector.broadcast %21 : vector<16x1xf32> to vector<16x32xf32>
      %23 = arith.subf %17, %22 : vector<16x32xf32>
      %24 = arith.mulf %23, %23 : vector<16x32xf32>
      %cst_18 = arith.constant dense<0.000000e+00> : vector<16xf32>
      %25 = vector.multi_reduction <add>, %24, %cst_18 [1] : vector<16x32xf32> to vector<16xf32>
      %26 = vector.shape_cast %25 : vector<16xf32> to vector<16x1xf32>
      %cst_19 = arith.constant 3.200000e+01 : f32
      %27 = vector.broadcast %cst_19 : f32 to vector<16x1xf32>
      %28 = arith.divf %26, %27 : vector<16x1xf32>
      %29 = vector.broadcast %21 : vector<16x1xf32> to vector<16x32xf32>
      %30 = arith.subf %17, %29 : vector<16x32xf32>
      %cst_20 = arith.constant 9.99999974E-6 : f32
      %31 = vector.broadcast %cst_20 : f32 to vector<16x1xf32>
      %32 = arith.addf %28, %31 : vector<16x1xf32>
      %33 = math.rsqrt %32 : vector<16x1xf32>
      %34 = vector.broadcast %33 : vector<16x1xf32> to vector<16x32xf32>
      %35 = arith.mulf %30, %34 : vector<16x32xf32>
      %c0_21 = arith.constant 0 : index
      %c0_22 = arith.constant 0 : index
      %36 = vector.load %arg6[%c0_21, %c0_22] : memref<1x32xf32, #tpu.memory_space<vmem>>, vector<1x32xf32>
      %37 = vector.broadcast %36 : vector<1x32xf32> to vector<16x32xf32>
      %38 = arith.mulf %35, %37 : vector<16x32xf32>
      %c0_23 = arith.constant 0 : index
      %c0_24 = arith.constant 0 : index
      %39 = vector.load %arg7[%c0_23, %c0_24] : memref<1x32xf32, #tpu.memory_space<vmem>>, vector<1x32xf32>
      %40 = vector.broadcast %39 : vector<1x32xf32> to vector<16x32xf32>
      %41 = arith.addf %38, %40 : vector<16x32xf32>
      %42 = arith.truncf %41 : vector<16x32xf32> to vector<16x32xbf16>
      %c0_25 = arith.constant 0 : index
      %c0_26 = arith.constant 0 : index
      %43 = vector.load %arg8[%c0_25, %c0_26] : memref<16x32xbf16, #tpu.memory_space<vmem>>, vector<16x32xbf16>
      tpu.vector_store %arg8[%c0_25, %c0_26], %42 {strides = array<i32>} : memref<16x32xbf16, #tpu.memory_space<vmem>>, vector<16x32xbf16>,
    } else {
    }
    return
  }
  func.func @transform_0(%arg0: i32, %arg1: i32) -> (i32, i32) {
    %c0_i32 = arith.constant 0 : i32
    return %arg0, %arg1 : i32, i32
  }
  func.func @transform_1(%arg0: i32, %arg1: i32) -> (i32, i32) {
    %c0_i32 = arith.constant 0 : i32
    %c0_i32_0 = arith.constant 0 : i32
    return %c0_i32, %arg1 : i32, i32
  }
  func.func @transform_2(%arg0: i32, %arg1: i32) -> (i32, i32) {
    %c0_i32 = arith.constant 0 : i32
    %c0_i32_0 = arith.constant 0 : i32
    %c0_i32_1 = arith.constant 0 : i32
    return %c0_i32, %c0_i32_0 : i32, i32
  }
  func.func @transform_3(%arg0: i32, %arg1: i32) -> (i32, i32) {
    %c0_i32 = arith.constant 0 : i32
    %c0_i32_0 = arith.constant 0 : i32
    return %arg0, %c0_i32 : i32, i32
  }
  func.func @transform_4(%arg0: i32, %arg1: i32) -> (i32, i32) {
    %c0_i32 = arith.constant 0 : i32
    %c0_i32_0 = arith.constant 0 : i32
    %c0_i32_1 = arith.constant 0 : i32
    return %c0_i32, %c0_i32_0 : i32, i32
  }
  func.func @transform_5(%arg0: i32, %arg1: i32) -> (i32, i32) {
    %c0_i32 = arith.constant 0 : i32
    %c0_i32_0 = arith.constant 0 : i32
    %c0_i32_1 = arith.constant 0 : i32
    return %c0_i32, %c0_i32_0 : i32, i32
  }
  func.func @transform_6(%arg0: i32, %arg1: i32) -> (i32, i32) {
    %c0_i32 = arith.constant 0 : i32
    %c0_i32_0 = arith.constant 0 : i32
    return %arg0, %c0_i32 : i32, i32
  }
}

module attributes {stable_mosaic.version = 11 : i64} {
  func.func @_mha_kernel(%arg0: i32, %arg1: i32, %arg2: memref<1x1x8x8xbf16, #tpu.memory_space<vmem>>, %arg3: memref<1x1x8x8xbf16, #tpu.memory_space<vmem>>, %arg4: memref<1x1x8x8xbf16, #tpu.memory_space<vmem>>, %arg5: memref<8x8xf32, #tpu.memory_space<vmem>>, %arg6: memref<1x1x8xf32, #tpu.memory_space<vmem>>, %arg7: memref<1x1x8x8xbf16, #tpu.memory_space<vmem>>, %arg8: memref<1x8x8xf32, #tpu.memory_space<vmem>>) attributes {dimension_semantics = [#tpu.dimension_semantics<parallel>, #tpu.dimension_semantics<arbitrary>], iteration_bounds = array<i64: 2, 4>, scalar_prefetch = 0 : i64, scratch_operands = 0 : i64, tpu.core_type = #tpu.core_type<tc>, window_params = [{transform_indices = @transform_0, window_bounds = array<i64: 1, 1, 8, 8>}, {transform_indices = @transform_1, window_bounds = array<i64: 1, 1, 8, 8>}, {transform_indices = @transform_2, window_bounds = array<i64: 1, 1, 8, 8>}, {pipeline_mode = #tpu.pipeline_mode<synchronous>, transform_indices = @transform_3, window_bounds = array<i64: 8, 8>}, {transform_indices = @transform_4, window_bounds = array<i64: 1, 1, 8>}, {transform_indices = @transform_5, window_bounds = array<i64: 1, 1, 8, 8>}, {transform_indices = @transform_6, window_bounds = array<i64: 1, 8, 8>}]} {
    %c0 = arith.constant 0 : index
    %c0_0 = arith.constant 0 : index
    %c0_1 = arith.constant 0 : index
    %c0_2 = arith.constant 0 : index
    %0 = vector.load %arg2[%c0, %c0_0, %c0_1, %c0_2] : memref<1x1x8x8xbf16, #tpu.memory_space<vmem>>, vector<1x1x8x8xbf16>
    %1 = vector.shape_cast %0 : vector<1x1x8x8xbf16> to vector<8x8xbf16>
    %c0_3 = arith.constant 0 : index
    %c0_4 = arith.constant 0 : index
    %c0_5 = arith.constant 0 : index
    %c0_6 = arith.constant 0 : index
    %2 = vector.load %arg3[%c0_3, %c0_4, %c0_5, %c0_6] : memref<1x1x8x8xbf16, #tpu.memory_space<vmem>>, vector<1x1x8x8xbf16>
    %3 = vector.shape_cast %2 : vector<1x1x8x8xbf16> to vector<8x8xbf16>
    %c0_7 = arith.constant 0 : index
    %c0_8 = arith.constant 0 : index
    %c0_9 = arith.constant 0 : index
    %c0_10 = arith.constant 0 : index
    %4 = vector.load %arg4[%c0_7, %c0_8, %c0_9, %c0_10] : memref<1x1x8x8xbf16, #tpu.memory_space<vmem>>, vector<1x1x8x8xbf16>
    %5 = vector.shape_cast %4 : vector<1x1x8x8xbf16> to vector<8x8xbf16>
    %c0_11 = arith.constant 0 : index
    %c0_12 = arith.constant 0 : index
    %6 = vector.load %arg5[%c0_11, %c0_12] : memref<8x8xf32, #tpu.memory_space<vmem>>, vector<8x8xf32>
    %c0_13 = arith.constant 0 : index
    %c0_14 = arith.constant 0 : index
    %c0_15 = arith.constant 0 : index
    %7 = vector.load %arg6[%c0_13, %c0_14, %c0_15] : memref<1x1x8xf32, #tpu.memory_space<vmem>>, vector<1x1x8xf32>
    %8 = vector.shape_cast %7 : vector<1x1x8xf32> to vector<1x8xf32>
    %9 = vector.broadcast %8 : vector<1x8xf32> to vector<8x8xf32>
    %10 = arith.addf %6, %9 : vector<8x8xf32>
    %cst = arith.constant 0.000000e+00 : f32
    %11 = vector.broadcast %cst : f32 to vector<8x8xf32>
    %12 = arith.cmpf ogt, %10, %11 : vector<8x8xf32>
    %cst_16 = arith.constant -1.000000e+09 : f32
    %cst_17 = arith.constant 0.000000e+00 : f32
    %13 = vector.broadcast %cst_16 : f32 to vector<8x8xf32>
    %14 = vector.broadcast %cst_17 : f32 to vector<8x8xf32>
    %15 = arith.select %12, %13, %14 : vector<8x8xi1>, vector<8x8xf32>
    %cst_18 = arith.constant dense<0.000000e+00> : vector<8x8xf32>
    %16 = tpu.matmul %1, %3, %cst_18 {dimension_numbers = #tpu.dot_dimension_numbers<[1], [1], [0], [0], [0, 0, 1, 0], [], []>} : vector<8x8xbf16>, vector<8x8xbf16>, vector<8x8xf32> -> vector<8x8xf32>
    %cst_19 = arith.constant 0.353553385 : f32
    %17 = vector.broadcast %cst_19 : f32 to vector<8x8xf32>
    %18 = arith.mulf %16, %17 : vector<8x8xf32>
    %19 = arith.addf %18, %15 : vector<8x8xf32>
    %cst_20 = arith.constant dense<0xFF800000> : vector<8xf32>
    %20 = vector.multi_reduction <maximumf>, %19, %cst_20 [1] : vector<8x8xf32> to vector<8xf32>
    %21 = vector.shape_cast %20 : vector<8xf32> to vector<8x1xf32>
    %22 = vector.broadcast %21 : vector<8x1xf32> to vector<8x8xf32>
    %23 = arith.subf %19, %22 : vector<8x8xf32>
    %24 = math.exp %23 : vector<8x8xf32>
    %cst_21 = arith.constant dense<0.000000e+00> : vector<8xf32>
    %25 = vector.multi_reduction <add>, %24, %cst_21 [1] : vector<8x8xf32> to vector<8xf32>
    %26 = vector.shape_cast %25 : vector<8xf32> to vector<8x1xf32>
    %27 = tpu.reciprocal %26 {approx = true} : vector<8x1xf32> -> vector<8x1xf32>
    %28 = vector.broadcast %27 : vector<8x1xf32> to vector<8x8xf32>
    %29 = arith.mulf %24, %28 : vector<8x8xf32>
    %30 = arith.truncf %29 : vector<8x8xf32> to vector<8x8xbf16>
    %cst_22 = arith.constant dense<0.000000e+00> : vector<8x8xf32>
    %31 = tpu.matmul %30, %5, %cst_22 {dimension_numbers = #tpu.dot_dimension_numbers<[1], [0], [0], [1], [0, 0, 1, 1], [], []>} : vector<8x8xbf16>, vector<8x8xbf16>, vector<8x8xf32> -> vector<8x8xf32>
    %32 = arith.truncf %31 : vector<8x8xf32> to vector<8x8xbf16>
    %c0_23 = arith.constant 0 : index
    %c0_24 = arith.constant 0 : index
    %c0_25 = arith.constant 0 : index
    %c0_26 = arith.constant 0 : index
    %33 = vector.load %arg7[%c0_23, %c0_24, %c0_25, %c0_26] : memref<1x1x8x8xbf16, #tpu.memory_space<vmem>>, vector<1x1x8x8xbf16>
    %34 = vector.shape_cast %33 : vector<1x1x8x8xbf16> to vector<8x8xbf16>
    %35 = vector.shape_cast %32 : vector<8x8xbf16> to vector<1x1x8x8xbf16>
    tpu.vector_store %arg7[%c0_23, %c0_24, %c0_25, %c0_26], %35 {strides = array<i32>} : memref<1x1x8x8xbf16, #tpu.memory_space<vmem>>, vector<1x1x8x8xbf16>,
    %c0_i32 = arith.constant 0 : i32
    %36 = arith.cmpi eq, %arg1, %c0_i32 : i32
    %37 = arith.extui %36 : i1 to i32
    %c0_i32_27 = arith.constant 0 : i32
    %38 = arith.cmpi ne, %37, %c0_i32_27 : i32
    scf.if %38 {
      %cst_35 = arith.constant 0.000000e+00 : f32
      %47 = vector.broadcast %cst_35 : f32 to vector<1x8x8xf32>
      %c0_36 = arith.constant 0 : index
      %c0_37 = arith.constant 0 : index
      %c0_38 = arith.constant 0 : index
      %48 = vector.load %arg8[%c0_36, %c0_37, %c0_38] : memref<1x8x8xf32, #tpu.memory_space<vmem>>, vector<1x8x8xf32>
      tpu.vector_store %arg8[%c0_36, %c0_37, %c0_38], %47 {strides = array<i32>} : memref<1x8x8xf32, #tpu.memory_space<vmem>>, vector<1x8x8xf32>,
    } else {
    }
    %c0_28 = arith.constant 0 : index
    %c0_29 = arith.constant 0 : index
    %c0_30 = arith.constant 0 : index
    %39 = vector.load %arg8[%c0_28, %c0_29, %c0_30] : memref<1x8x8xf32, #tpu.memory_space<vmem>>, vector<1x8x8xf32>
    %40 = vector.shape_cast %39 : vector<1x8x8xf32> to vector<8x8xf32>
    %cst_31 = arith.constant 2.500000e-01 : f32
    %41 = vector.broadcast %cst_31 : f32 to vector<8x8xf32>
    %42 = arith.mulf %29, %41 : vector<8x8xf32>
    %43 = arith.addf %40, %42 : vector<8x8xf32>
    %c0_32 = arith.constant 0 : index
    %c0_33 = arith.constant 0 : index
    %c0_34 = arith.constant 0 : index
    %44 = vector.load %arg8[%c0_32, %c0_33, %c0_34] : memref<1x8x8xf32, #tpu.memory_space<vmem>>, vector<1x8x8xf32>
    %45 = vector.shape_cast %44 : vector<1x8x8xf32> to vector<8x8xf32>
    %46 = vector.shape_cast %43 : vector<8x8xf32> to vector<1x8x8xf32>
    tpu.vector_store %arg8[%c0_32, %c0_33, %c0_34], %46 {strides = array<i32>} : memref<1x8x8xf32, #tpu.memory_space<vmem>>, vector<1x8x8xf32>,
    return
  }
  func.func @transform_0(%arg0: i32, %arg1: i32) -> (i32, i32, i32, i32) {
    %c0_i32 = arith.constant 0 : i32
    %c0_i32_0 = arith.constant 0 : i32
    %c0_i32_1 = arith.constant 0 : i32
    return %arg0, %arg1, %c0_i32, %c0_i32_0 : i32, i32, i32, i32
  }
  func.func @transform_1(%arg0: i32, %arg1: i32) -> (i32, i32, i32, i32) {
    %c0_i32 = arith.constant 0 : i32
    %c0_i32_0 = arith.constant 0 : i32
    %c0_i32_1 = arith.constant 0 : i32
    return %arg0, %arg1, %c0_i32, %c0_i32_0 : i32, i32, i32, i32
  }
  func.func @transform_2(%arg0: i32, %arg1: i32) -> (i32, i32, i32, i32) {
    %c0_i32 = arith.constant 0 : i32
    %c0_i32_0 = arith.constant 0 : i32
    %c0_i32_1 = arith.constant 0 : i32
    return %arg0, %arg1, %c0_i32, %c0_i32_0 : i32, i32, i32, i32
  }
  func.func @transform_3(%arg0: i32, %arg1: i32) -> (i32, i32) {
    %c0_i32 = arith.constant 0 : i32
    %c0_i32_0 = arith.constant 0 : i32
    %c0_i32_1 = arith.constant 0 : i32
    return %c0_i32, %c0_i32_0 : i32, i32
  }
  func.func @transform_4(%arg0: i32, %arg1: i32) -> (i32, i32, i32) {
    %c0_i32 = arith.constant 0 : i32
    %c0_i32_0 = arith.constant 0 : i32
    %c0_i32_1 = arith.constant 0 : i32
    return %arg0, %c0_i32, %c0_i32_0 : i32, i32, i32
  }
  func.func @transform_5(%arg0: i32, %arg1: i32) -> (i32, i32, i32, i32) {
    %c0_i32 = arith.constant 0 : i32
    %c0_i32_0 = arith.constant 0 : i32
    %c0_i32_1 = arith.constant 0 : i32
    return %arg0, %arg1, %c0_i32, %c0_i32_0 : i32, i32, i32, i32
  }
  func.func @transform_6(%arg0: i32, %arg1: i32) -> (i32, i32, i32) {
    %c0_i32 = arith.constant 0 : i32
    %c0_i32_0 = arith.constant 0 : i32
    %c0_i32_1 = arith.constant 0 : i32
    return %arg0, %c0_i32, %c0_i32_0 : i32, i32, i32
  }
}

module attributes {stable_mosaic.version = 11 : i64} {
  func.func @_ffn_kernel(%arg0: i32, %arg1: i32, %arg2: memref<16x32xbf16, #tpu.memory_space<vmem>>, %arg3: memref<2048x32xbf16, #tpu.memory_space<vmem>>, %arg4: memref<1x2048xf32, #tpu.memory_space<vmem>>, %arg5: memref<32x2048xbf16, #tpu.memory_space<vmem>>, %arg6: memref<1x32xf32, #tpu.memory_space<vmem>>, %arg7: memref<16x32xbf16, #tpu.memory_space<vmem>>, %arg8: memref<1x32xf32, #tpu.memory_space<vmem>>, %arg9: memref<1x32xf32, #tpu.memory_space<vmem>>, %arg10: memref<16x32xf32, #tpu.memory_space<vmem>>, %arg11: memref<16x2048xf32, #tpu.memory_space<vmem>>) attributes {dimension_semantics = [#tpu.dimension_semantics<parallel>, #tpu.dimension_semantics<arbitrary>], iteration_bounds = array<i64: 1, 1>, scalar_prefetch = 0 : i64, scratch_operands = 1 : i64, tpu.core_type = #tpu.core_type<tc>, window_params = [{transform_indices = @transform_0, window_bounds = array<i64: 16, 32>}, {transform_indices = @transform_1, window_bounds = array<i64: 2048, 32>}, {pipeline_mode = #tpu.pipeline_mode<synchronous>, transform_indices = @transform_2, window_bounds = array<i64: 1, 2048>}, {pipeline_mode = #tpu.pipeline_mode<synchronous>, transform_indices = @transform_3, window_bounds = array<i64: 32, 2048>}, {pipeline_mode = #tpu.pipeline_mode<synchronous>, transform_indices = @transform_4, window_bounds = array<i64: 1, 32>}, {transform_indices = @transform_5, window_bounds = array<i64: 16, 32>}, {pipeline_mode = #tpu.pipeline_mode<synchronous>, transform_indices = @transform_6, window_bounds = array<i64: 1, 32>}, {pipeline_mode = #tpu.pipeline_mode<synchronous>, transform_indices = @transform_7, window_bounds = array<i64: 1, 32>}, {transform_indices = @transform_8, window_bounds = array<i64: 16, 32>}]} {
    %c0_i32 = arith.constant 0 : i32
    %0 = arith.cmpi eq, %arg1, %c0_i32 : i32
    %1 = arith.extui %0 : i1 to i32
    %c0_i32_0 = arith.constant 0 : i32
    %2 = arith.cmpi ne, %1, %c0_i32_0 : i32
    scf.if %2 {
      %cst_10 = arith.constant 0.000000e+00 : f32
      %12 = vector.broadcast %cst_10 : f32 to vector<16x2048xf32>
      %c0_11 = arith.constant 0 : index
      %c0_12 = arith.constant 0 : index
      %13 = vector.load %arg11[%c0_11, %c0_12] : memref<16x2048xf32, #tpu.memory_space<vmem>>, vector<16x2048xf32>
      tpu.vector_store %arg11[%c0_11, %c0_12], %12 {strides = array<i32>} : memref<16x2048xf32, #tpu.memory_space<vmem>>, vector<16x2048xf32>,
    } else {
    }
    %c0 = arith.constant 0 : index
    %c0_1 = arith.constant 0 : index
    %3 = vector.load %arg11[%c0, %c0_1] : memref<16x2048xf32, #tpu.memory_space<vmem>>, vector<16x2048xf32>
    %c0_2 = arith.constant 0 : index
    %c0_3 = arith.constant 0 : index
    %4 = vector.load %arg2[%c0_2, %c0_3] : memref<16x32xbf16, #tpu.memory_space<vmem>>, vector<16x32xbf16>
    %c0_4 = arith.constant 0 : index
    %c0_5 = arith.constant 0 : index
    %5 = vector.load %arg3[%c0_4, %c0_5] : memref<2048x32xbf16, #tpu.memory_space<vmem>>, vector<2048x32xbf16>
    %cst = arith.constant dense<0.000000e+00> : vector<16x2048xf32>
    %6 = tpu.matmul %4, %5, %cst {dimension_numbers = #tpu.dot_dimension_numbers<[1], [1], [0], [0], [0, 0, 1, 0], [], []>} : vector<16x32xbf16>, vector<2048x32xbf16>, vector<16x2048xf32> -> vector<16x2048xf32>
    %7 = arith.addf %3, %6 : vector<16x2048xf32>
    %c0_6 = arith.constant 0 : index
    %c0_7 = arith.constant 0 : index
    %8 = vector.load %arg11[%c0_6, %c0_7] : memref<16x2048xf32, #tpu.memory_space<vmem>>, vector<16x2048xf32>
    tpu.vector_store %arg11[%c0_6, %c0_7], %7 {strides = array<i32>} : memref<16x2048xf32, #tpu.memory_space<vmem>>, vector<16x2048xf32>,
    %c0_i32_8 = arith.constant 0 : i32
    %9 = arith.cmpi eq, %arg1, %c0_i32_8 : i32
    %10 = arith.extui %9 : i1 to i32
    %c0_i32_9 = arith.constant 0 : i32
    %11 = arith.cmpi ne, %10, %c0_i32_9 : i32
    scf.if %11 {
      %c0_10 = arith.constant 0 : index
      %c0_11 = arith.constant 0 : index
      %12 = vector.load %arg11[%c0_10, %c0_11] : memref<16x2048xf32, #tpu.memory_space<vmem>>, vector<16x2048xf32>
      %c0_12 = arith.constant 0 : index
      %c0_13 = arith.constant 0 : index
      %13 = vector.load %arg4[%c0_12, %c0_13] : memref<1x2048xf32, #tpu.memory_space<vmem>>, vector<1x2048xf32>
      %14 = vector.broadcast %13 : vector<1x2048xf32> to vector<16x2048xf32>
      %15 = arith.addf %12, %14 : vector<16x2048xf32>
      %cst_14 = arith.constant 0.000000e+00 : f32
      %16 = vector.broadcast %cst_14 : f32 to vector<16x2048xf32>
      %17 = arith.maximumf %15, %16 : vector<16x2048xf32>
      %18 = arith.truncf %17 : vector<16x2048xf32> to vector<16x2048xbf16>
      %c0_15 = arith.constant 0 : index
      %c0_16 = arith.constant 0 : index
      %19 = vector.load %arg5[%c0_15, %c0_16] : memref<32x2048xbf16, #tpu.memory_space<vmem>>, vector<32x2048xbf16>
      %cst_17 = arith.constant dense<0.000000e+00> : vector<16x32xf32>
      %20 = tpu.matmul %18, %19, %cst_17 {dimension_numbers = #tpu.dot_dimension_numbers<[1], [1], [0], [0], [0, 0, 1, 0], [], []>} : vector<16x2048xbf16>, vector<32x2048xbf16>, vector<16x32xf32> -> vector<16x32xf32>
      %c0_18 = arith.constant 0 : index
      %c0_19 = arith.constant 0 : index
      %21 = vector.load %arg6[%c0_18, %c0_19] : memref<1x32xf32, #tpu.memory_space<vmem>>, vector<1x32xf32>
      %22 = vector.broadcast %21 : vector<1x32xf32> to vector<16x32xf32>
      %23 = arith.addf %20, %22 : vector<16x32xf32>
      %c0_20 = arith.constant 0 : index
      %c0_21 = arith.constant 0 : index
      %24 = vector.load %arg7[%c0_20, %c0_21] : memref<16x32xbf16, #tpu.memory_space<vmem>>, vector<16x32xbf16>
      %25 = arith.extf %24 : vector<16x32xbf16> to vector<16x32xf32>
      %26 = arith.addf %23, %25 : vector<16x32xf32>
      %cst_22 = arith.constant dense<0.000000e+00> : vector<16xf32>
      %27 = vector.multi_reduction <add>, %26, %cst_22 [1] : vector<16x32xf32> to vector<16xf32>
      %28 = vector.shape_cast %27 : vector<16xf32> to vector<16x1xf32>
      %cst_23 = arith.constant 3.200000e+01 : f32
      %29 = vector.broadcast %cst_23 : f32 to vector<16x1xf32>
      %30 = arith.divf %28, %29 : vector<16x1xf32>
      %31 = vector.broadcast %30 : vector<16x1xf32> to vector<16x32xf32>
      %32 = arith.subf %26, %31 : vector<16x32xf32>
      %33 = arith.mulf %32, %32 : vector<16x32xf32>
      %cst_24 = arith.constant dense<0.000000e+00> : vector<16xf32>
      %34 = vector.multi_reduction <add>, %33, %cst_24 [1] : vector<16x32xf32> to vector<16xf32>
      %35 = vector.shape_cast %34 : vector<16xf32> to vector<16x1xf32>
      %cst_25 = arith.constant 3.200000e+01 : f32
      %36 = vector.broadcast %cst_25 : f32 to vector<16x1xf32>
      %37 = arith.divf %35, %36 : vector<16x1xf32>
      %38 = vector.broadcast %30 : vector<16x1xf32> to vector<16x32xf32>
      %39 = arith.subf %26, %38 : vector<16x32xf32>
      %cst_26 = arith.constant 9.99999974E-6 : f32
      %40 = vector.broadcast %cst_26 : f32 to vector<16x1xf32>
      %41 = arith.addf %37, %40 : vector<16x1xf32>
      %42 = math.rsqrt %41 : vector<16x1xf32>
      %43 = vector.broadcast %42 : vector<16x1xf32> to vector<16x32xf32>
      %44 = arith.mulf %39, %43 : vector<16x32xf32>
      %c0_27 = arith.constant 0 : index
      %c0_28 = arith.constant 0 : index
      %45 = vector.load %arg8[%c0_27, %c0_28] : memref<1x32xf32, #tpu.memory_space<vmem>>, vector<1x32xf32>
      %46 = vector.broadcast %45 : vector<1x32xf32> to vector<16x32xf32>
      %47 = arith.mulf %44, %46 : vector<16x32xf32>
      %c0_29 = arith.constant 0 : index
      %c0_30 = arith.constant 0 : index
      %48 = vector.load %arg9[%c0_29, %c0_30] : memref<1x32xf32, #tpu.memory_space<vmem>>, vector<1x32xf32>
      %49 = vector.broadcast %48 : vector<1x32xf32> to vector<16x32xf32>
      %50 = arith.addf %47, %49 : vector<16x32xf32>
      %c0_31 = arith.constant 0 : index
      %c0_32 = arith.constant 0 : index
      %51 = vector.load %arg10[%c0_31, %c0_32] : memref<16x32xf32, #tpu.memory_space<vmem>>, vector<16x32xf32>
      tpu.vector_store %arg10[%c0_31, %c0_32], %50 {strides = array<i32>} : memref<16x32xf32, #tpu.memory_space<vmem>>, vector<16x32xf32>,
    } else {
    }
    return
  }
  func.func @transform_0(%arg0: i32, %arg1: i32) -> (i32, i32) {
    %c0_i32 = arith.constant 0 : i32
    return %arg0, %arg1 : i32, i32
  }
  func.func @transform_1(%arg0: i32, %arg1: i32) -> (i32, i32) {
    %c0_i32 = arith.constant 0 : i32
    %c0_i32_0 = arith.constant 0 : i32
    return %c0_i32, %arg1 : i32, i32
  }
  func.func @transform_2(%arg0: i32, %arg1: i32) -> (i32, i32) {
    %c0_i32 = arith.constant 0 : i32
    %c0_i32_0 = arith.constant 0 : i32
    %c0_i32_1 = arith.constant 0 : i32
    return %c0_i32, %c0_i32_0 : i32, i32
  }
  func.func @transform_3(%arg0: i32, %arg1: i32) -> (i32, i32) {
    %c0_i32 = arith.constant 0 : i32
    %c0_i32_0 = arith.constant 0 : i32
    %c0_i32_1 = arith.constant 0 : i32
    return %c0_i32, %c0_i32_0 : i32, i32
  }
  func.func @transform_4(%arg0: i32, %arg1: i32) -> (i32, i32) {
    %c0_i32 = arith.constant 0 : i32
    %c0_i32_0 = arith.constant 0 : i32
    %c0_i32_1 = arith.constant 0 : i32
    return %c0_i32, %c0_i32_0 : i32, i32
  }
  func.func @transform_5(%arg0: i32, %arg1: i32) -> (i32, i32) {
    %c0_i32 = arith.constant 0 : i32
    %c0_i32_0 = arith.constant 0 : i32
    return %arg0, %c0_i32 : i32, i32
  }
  func.func @transform_6(%arg0: i32, %arg1: i32) -> (i32, i32) {
    %c0_i32 = arith.constant 0 : i32
    %c0_i32_0 = arith.constant 0 : i32
    %c0_i32_1 = arith.constant 0 : i32
    return %c0_i32, %c0_i32_0 : i32, i32
  }
  func.func @transform_7(%arg0: i32, %arg1: i32) -> (i32, i32) {
    %c0_i32 = arith.constant 0 : i32
    %c0_i32_0 = arith.constant 0 : i32
    %c0_i32_1 = arith.constant 0 : i32
    return %c0_i32, %c0_i32_0 : i32, i32
  }
  func.func @transform_8(%arg0: i32, %arg1: i32) -> (i32, i32) {
    %c0_i32 = arith.constant 0 : i32
    %c0_i32_0 = arith.constant 0 : i32
    return %arg0, %c0_i32 : i32, i32
  }
}

</mosaic_0001>

<bundles_post_ra>
// kernel: transformer_block_forward.5
= control target key start
LH: loop header
LB: loop body
LE: loop exit
PB: predicated region body
PF: predicated region fallthrough
CT: control target
= control target key end

     0   :  { %12 = vsyncpa [#allocation3], 0  ;;  %s1093_s0 = inlined_call_operand.vmem [shape: bf16[2,4,8,8], index: 0, kind: input, shape index: {}]   ;;  %s1094_s1 = inlined_call_operand.vmem [shape: bf16[2,4,8,8], index: 1, kind: input, shape index: {}]   ;;  %s1095_s2 = inlined_call_operand.vmem [shape: bf16[2,4,8,8], index: 2, kind: input, shape index: {}]   ;;  %s1096_s3 = inlined_call_operand.vmem [shape: f32[8,8], index: 3, kind: input, shape index: {}]   ;;  %s1097_s4 = inlined_call_operand.vmem [shape: f32[2,1,8], index: 4, kind: input, shape index: {}]   ;;  %s1098_s5 = inlined_call_operand.vmem [shape: bf16[2,4,8,8], index: 5, kind: output, shape index: {0}]   ;;  %s1099_s6 = inlined_call_operand.hbm [shape: f32[2,8,8], index: 6, kind: output, shape index: {1}]  }
   0x1   :  { %14 = vsyncpa [#allocation3 + $0x1], 0  ;;  %s936_s21 = smov 0   ;;  %s938_s22 = smov 0  }
   0x2   :  { %s940_s23 = smov 0   ;;  %s942_s24 = smov 0  }
   0x3   :  { %s944_s25 = smov 0   ;;  %s946_s26 = smov 0  }
   0x4   :  { %s948_s27 = smov 0   ;;  %s950_s28 = smov 0  }
   0x5 LB: > { %1103 = sst [smem:[#allocation5_spill]] %s891_s27  ;;  %s687_s29 = sadd.s32 4294967295, %s895_s28   ;;  %s895_s28 = sphi %s950_s28, %s20_s28   ;;  %s891_s27 = sphi %s948_s27, %s1111_s27   ;;  %s887_s26 = sphi %s946_s26, %s1116_s26   ;;  %s883_s25 = sphi %s944_s25, %s1109_s25   ;;  %s879_s24 = sphi %s942_s24, %s1115_s24   ;;  %s875_s23 = sphi %s940_s23, %s1114_s23   ;;  %s871_s22 = sphi %s938_s22, %s1113_s22   ;;  %s867_s21 = sphi %s936_s21, %s1112_s21  }
   0x6   : > { %s688_s30 = sadd.s32 4294967294, %s895_s28   ;;  %s29_s7 = sadd.s32 1, %s887_s26 }
   0x7   : > { %p30_p0 = scmp.ge.s32.totalorder %s29_s7, 4  ;;  %s32_s8 = sadd.s32 1, %s891_s27 }
   0x8   : > { %p208_p1 = scmp.ne.s32.totalorder %s875_s23, %s871_s22  ;;  %p209_p2 = scmp.eq.s32.totalorder %s687_s29, 7 }
   0x9   : > { %s1118_s7 = smov (%p30_p0, %s29_s7), 0  ;;  %s1120_s8 = smov (!%p30_p0, %s32_s8), %s891_s27 }
   0xa   : > { %1104 = sst [smem:[#allocation6_spill]] %s1118_s7  ;;  %p985_p3 = por %p209_p2, %p208_p1 }
   0xb   : > { %p214_p4 = scmp.ne.s32.totalorder %s871_s22, %s867_s21  ;;  %p34_p5 = scmp.ge.s32.totalorder %s1120_s8, 2 }
   0xc   : > { %p215_p6 = scmp.eq.s32.totalorder %s688_s30, 7  ;;  %p691_p7 = scmp.ge.s32.totalorder %s895_s28, 1 }
   0xd   : > { %p275_p8 = scmp.lt.s32.totalorder %s895_s28, 9  ;;  %s1122_s8 = smov (%p34_p5, %s1120_s8), 0 }
   0xe   : > { %1106 = sst [smem:[#allocation7_spill]] %s1122_s8  ;;  %p995_p9 = por %p215_p6, %p214_p4 }
   0xf   : > { %p276_p10 = pnand %p691_p7, %p275_p8  ;;  %s195_s11 = ssub.s32 %s891_s27, %s1122_s8 }
  0x10   : > { %s198_s12 = sadd.s32 1, %s875_s23  ;;  %p196_p11 = scmp.eq.s32.totalorder %s195_s11, 0 }
  0x11   : > { %279 = sbr.rel (%p276_p10) target bundleno = 773 (0x305), region = 40  ;;  %s1100_s14 = sand.u32 (!%p276_p10), 1, %s871_s22  }
  0x12   : > { %s1003_s13 = scalar_select %p196_p11, %s875_s23, %s198_s12  }
  0x13   : > { %p335_p12 = scmp.lt.s32.totalorder (!%p276_p10), %s883_s25, 1  ;;  %s1009_s15 = sshll.u32 (!%p276_p10), %s1100_s14, 3 }
  0x14   : > { %p337_p13 = scmp.lt.s32.totalorder (!%p276_p10), %s879_s24, 3  ;;  %s334_s30 = scalar_lea.vmem (!%p276_p10), [#allocation2], %s1009_s15 }
  0x15   : > { %p704_p0 = scmp.ne.s32.totalorder (!%p276_p10), %s879_s24, 0 }
  0x16   : > { %v897_v0 = vmov 0.0   ;;  %vm898_vm0 = vmmov 0   ;;  %s336_s16 = scalar_select %p335_p12, %s883_s25, 1  ;;  %vm385_vm1 = vcmask 64512   ;;  %v374_v4 = vld [vmem:[%s1096_s3] sm:$0xff]  ;;  %vm449_vm3 = vcmask 1043456  }
  0x17   : > { %713 = vmatprep.subr.bf16.mxu0 %v897_v0  ;;  %715 = vmatprep.mubr.msk.bf16.mxu0 %vm898_vm0, %v897_v0  ;;  %s338_s17 = scalar_select %p337_p13, %s879_s24, 3  ;;  %vm494_vm4 = vcmask 60416  }
  0x18   : > { %719 = vmatprep.subr.bf16.mxu1 %v897_v0  ;;  %721 = vmatprep.mubr.msk.bf16.mxu1 %vm898_vm0, %v897_v0  ;;  %s693_s18 = sshll.u32 %s336_s16, 2 }
  0x19   : > { %s340_s19 = sadd.s32 %s693_s18, %s338_s17 }
  0x1a   : > { %s1014_s20 = sshll.u32 %s340_s19, 2  ;;  %s361_s19 = scalar_lea.vmem %s1097_s4, %s336_s16 }
  0x1b   : > { %s350_s11 = scalar_lea.vmem %s1094_s1, %s1014_s20  ;;  %s342_s8 = scalar_lea.vmem %s1093_s0, %s1014_s20  ;;  %v701_v5 = vld [vmem:[%s361_s19] ss:$0 sm:$0xff] }
  0x1c   : > { %v372_v1 = vld [vmem:[%s350_s11] sm:$0xf]  ;;  %v382_v6 = vadd.f32 %v701_v5, %v374_v4  ;;  %s369_s29 = scalar_lea.vmem %s1098_s5, %s1014_s20 }
  0x1d   : > { %v390_v2 = vsel %vm385_vm1, %v372_v1, 0  ;;  %v371_v3 = vld [vmem:[%s342_s8] sm:$0xf]  ;;  %s358_s8 = scalar_lea.vmem %s1095_s2, %s1014_s20 }
  0x1e   : > { %714 = vmatpush3.bf16.xpose.msra.mxu0 %v390_v2  ;;  %vm383_vm2 = vcmp.gt.f32.partialorder %v382_v6, 0.0  ;;  %v373_v20 = vld [vmem:[%s358_s8] sm:$0xf] }
  0x1f   : > { %v384_v8 = vsel %vm383_vm2, -1e+09, %v897_v0  ;;  %v451_v21 = vsel %vm449_vm3, %v373_v20, 0 }
  0x20   : > { %720 = vmatpush3.bf16.msra.mxu1 %v451_v21 }
  0x25   : > { %716 = vmatmul.mubr.msk.bf16.vlgmr.msra.gmra.mxu0 %vm385_vm1, %v371_v3 }
  0xe5   : > { %v426_v7 = vpop.f32.mrf.mxu0 }
  0xe6   : > { %v432_v9 = vmul.f32 0.35355338, %v426_v7 }
  0xe7   : > { %v717_v10 = vpop.f32.mrf.mxu0 }
  0xe8   : > { %v433_v11 = vadd.f32 %v432_v9, %v384_v8 }
  0xe9   : > { %v429_v12 = vpop.f32.mrf.mxu0 }
  0xea   : > { %v434_v13 = vsel %vm385_vm1, %v433_v11, -inf }
  0xeb   : > { %435 = vmax.xlane.f32.xlu0 %v434_v13  ;;  %v718_v14 = vpop.f32.mrf.mxu0 }
 0x174   : > { %v436_v15 = vpop.xlane.xlu0 %435 }
 0x175   : > { %v437_v16 = vsub.f32 %v433_v11, %v436_v15 }
 0x177   : > { %v438_v17 = vmul.f32 1.442695, %v437_v16 }
 0x179   : > { %799 = vpow2.f32 %v438_v17 }
 0x186   : > { %v800_v18 = vpop.eup %799 }
 0x187   : > { %v440_v19 = vsel %vm385_vm1, %v800_v18, 0.0 }
 0x188   : > { %441 = vadd.xlane.f32.xlu0 %v440_v19 }
 0x211   : > { %v442_v22 = vpop.xlane.xlu0 %441 }
 0x212   : > { %801 = vrcp.f32 %v442_v22 }
 0x21f   : > { %v802_v23 = vpop.eup %801 }
 0x220   : > { %v444_v24 = vmul.f32 %v802_v23, %v800_v18 }
 0x222   : > { %v445_v25 = vpack.c.bf16 %v444_v24, %v444_v24 }
 0x224   : > { %722 = vmatmul.mubr.msk.bf16.vlgmr.msra.gmra.mxu1 %vm385_vm1, %v445_v25 }
 0x2e4   : > { %v487_v26 = vpop.f32.mrf.mxu1 }
 0x2e5   : > { %v493_v27 = vpack.c.bf16 %v487_v26, %v487_v26 }
 0x2e6   : > { %v723_v28 = vpop.f32.mrf.mxu1  ;;  %499 = sbr.rel (%p704_p0) target bundleno = 749 (0x2ed), region = 44 }
 0x2e7   : > { %495 = vst.msk [vmem:[%s369_s29] sm:$0xf] %vm494_vm4, %v493_v27 }
 0x2e8   : > { %v490_v29 = vpop.f32.mrf.mxu1 }
 0x2ea   : > { %v724_v30 = vpop.f32.mrf.mxu1 }
 0x2eb   : > { %v899_v31 = vmov 0.0  }
 0x2ec   : > { %500 = vst.msk [vmem:[%s334_s30] sm:$0xff] %vm385_vm1, %v899_v31 }
 0x2ed PF: > { %v502_v33 = vmul.f32 0.25, %v444_v24  ;;  %s706_s20 = sshll.u32 %s883_s25, 7  ;;  %s530_s11 = sshll.u32 %s334_s30, 4  ;;  %s531_s11 = int_to_ptr.vmem [resolvable:$true] %s530_s11 }
 0x2ee   : > { %s528_s18 = scalar_lea.hbm %s1099_s6, %s706_s20  ;;  %s1108_s24 = sand.u32 1, %s871_s22  }
 0x2ef   : > { %s514_s15 = scalar_lea.sflag [#allocation3], %s1108_s24  ;;  %s803_s19 = scalar_lea.vmem %s531_s11, 128 }
 0x2f0   : > { %p804_p1 = scmp.ne.s32.totalorder %s531_s11, %s803_s19  ;;  %s900_s27 = smov [#allocation2]  }
 0x2f1   : > { %s807_s7 = sshll.u32 %s900_s27, 4  ;;  %s808_s7 = int_to_ptr.vmem [resolvable:$false] %s807_s7 }
 0x2f2   : > { %p805_p2 = pnand %p804_p1, %p985_p3  ;;  %s809_s25 = scalar_lea.vmem %s808_s7, 256 }
 0x2f3   : > { %v501_v32 = vld [vmem:[%s334_s30] sm:$0xff]  ;;  %p810_p5 = scmp.lt.s32.totalorder %s531_s11, %s808_s7  ;;  %p811_p6 = scmp.lt.s32.totalorder %s809_s25, %s803_s19 }
 0x2f4   : > { %v503_v34 = vadd.f32 %v502_v33, %v501_v32  ;;  %p806_p4 = pneg %p805_p2 }
 0x2f5   : > { %p812_p7 = por %p811_p6, %p810_p5 }
 0x2f6   : > { %504 = vst.msk [vmem:[%s334_s30] sm:$0xff] %vm385_vm1, %v503_v34 }
 0x2f7   : > { %p813_p8 = pnand %p812_p7, %p806_p4 }
 0x2f9   : > { %816 = shalt.err (!%p813_p8)
}
 0x2fa   : > { %s817_s8 = scalar_lea.hbm %s528_s18, 128  ;;  %s821_s29 = scalar_lea.hbm %s1099_s6, 256 }
 0x2fb   : > { %p818_p10 = scmp.ne.s32.totalorder %s528_s18, %s817_s8  ;;  %p822_p13 = scmp.lt.s32.totalorder %s528_s18, %s1099_s6 }
 0x2fc   : > { %p823_p0 = scmp.lt.s32.totalorder %s821_s29, %s817_s8 }
 0x2fd   : > { %p819_p11 = pnand %p818_p10, %p985_p3 }
 0x2fe   : > { %p824_p1 = por %p823_p0, %p822_p13 }
 0x2ff   : > { %p820_p12 = pneg %p819_p11 }
 0x301   : > { %p825_p2 = pnand %p824_p1, %p820_p12 }
 0x303   : > { %828 = shalt.err (!%p825_p2)
}
 0x304   : > { %725 = dma.vmem_to_hbm [thread:$0]  (%p985_p3), %s531_s11, 128, %s528_s18, %s514_s15  }
 0x305 PF: > { %p731_p4 = scmp.ge.s32.totalorder %s895_s28, 2  ;;  %s553_s12 = sand.u32 1, %s867_s21  }
 0x306   : > { %s554_s17 = scalar_lea.sflag [#allocation3], %s553_s12 }
 0x307   : > { %p728_p5 = pnand %p731_p4, %p995_p9 }
 0x309   : > { %p729_p6 = pneg %p728_p5 }
 0x30b   : > { %862 = dma.done.wait (%p729_p6), %s554_s17, 128  }
 0x30c   : > { %864 = vsyncadd (%p729_p6), %s554_s17, 4294967168  ;;  %s20_s28 = sadd.s32 1, %s895_s28   ;;  %s1109_s25 = sld [smem:[#allocation5_spill]] }
 0x30d   : > { %p17_p7 = scmp.ge.s32.totalorder %s20_s28, 10   ;;  %s1110_s9 = sld [smem:[#allocation6_spill]] }
 0x30e   : > { %s1111_s27 = sld [smem:[#allocation7_spill]]  ;;  %s1112_s21 = smov %s871_s22 }
 0x30f   : > { %s1113_s22 = smov %s875_s23  ;;  %s1114_s23 = smov %s1003_s13 }
 0x310   : > { %s1115_s24 = smov %s887_s26  ;;  %19 = sbr.rel (!%p17_p7) target bundleno = 5 (0x5), region = 100 }
 0x313   : > { %s1116_s26 = smov %s1110_s9 }
 0x315   :  { %559 = vsyncpa [#allocation3], 1 }
 0x316   :  { %561 = vsyncpa [#allocation3 + $0x1], 1 }

// kernel: transformer_block_forward.4
= control target key start
LH: loop header
LB: loop body
LE: loop exit
PB: predicated region body
PF: predicated region fallthrough
CT: control target
= control target key end

     0   :  { %vm40_vm0 = vcmask 261120   ;;  %v411_v0 = vmov 0.0   ;;  %vm412_vm1 = vmmov 0   ;;  %vm289_vm2 = vcmask 257024   ;;  %s566_s3 = inlined_call_operand.vmem [shape: bf16[32,32], index: 3, kind: input, shape index: {}]   ;;  %s567_s4 = inlined_call_operand.vmem [shape: bf16[32,32], index: 4, kind: input, shape index: {}]   ;;  %s568_s5 = inlined_call_operand.vmem [shape: bf16[32,32], index: 5, kind: input, shape index: {}]   ;;  %s569_s0 = inlined_call_operand.vmem [shape: f32[16,32], index: 0, kind: input, shape index: {}]   ;;  %s570_s1 = inlined_call_operand.vmem [shape: f32[16,32], index: 1, kind: input, shape index: {}]   ;;  %s571_s2 = inlined_call_operand.vmem [shape: f32[16,32], index: 2, kind: input, shape index: {}]   ;;  %s572_s6 = inlined_call_operand.vmem [shape: f32[1,32], index: 6, kind: input, shape index: {}]   ;;  %s573_s7 = inlined_call_operand.vmem [shape: f32[1,32], index: 7, kind: input, shape index: {}]   ;;  %s574_s9 = inlined_call_operand.vmem [shape: bf16[16,32], index: 9, kind: output, shape index: {0}]   ;;  %s575_s10 = inlined_call_operand.vmem [shape: bf16[16,32], index: 10, kind: output, shape index: {1}]   ;;  %s576_s8 = inlined_call_operand.vmem [shape: f32[1,32], index: 8, kind: input, shape index: {}]   ;;  %s577_s11 = inlined_call_operand.vmem [shape: bf16[16,32], index: 11, kind: output, shape index: {2}]  }
   0x1   :  { %379 = vmatprep.subr.bf16.mxu0 %v411_v0  ;;  %v405_v1 = vld [vmem:[%s566_s3 + $0x8] sm:$0xff]   ;;  %41 = vst.msk [vmem:[#allocation2] sm:$0xff] %vm40_vm0, %v411_v0  ;;  %42 = vst.msk [vmem:[#allocation2 + $0x8] sm:$0xff] %vm40_vm0, %v411_v0  ;;  %387 = vmatprep.subr.bf16.mxu1 %v411_v0  ;;  %v406_v4 = vld [vmem:[%s566_s3] sm:$0xff]  }
   0x2   :  { %43 = vst.msk [vmem:[#allocation3] sm:$0xff] %vm40_vm0, %v411_v0  ;;  %44 = vst.msk [vmem:[#allocation3 + $0x8] sm:$0xff] %vm40_vm0, %v411_v0  ;;  %383 = vmatprep.mubr.msk.bf16.mxu0 %vm412_vm1, %v411_v0  ;;  %391 = vmatprep.mubr.msk.bf16.mxu1 %vm412_vm1, %v411_v0  ;;  %v74_v2 = vsel %vm40_vm0, %v405_v1, 0  ;;  %v407_v3 = vld [vmem:[%s567_s4 + $0x8] sm:$0xff]   ;;  %v409_v6 = vld [vmem:[%s567_s4] sm:$0xff]   ;;  %v71_v7 = vsel %vm40_vm0, %v406_v4, 0 }
   0x3   :  { %45 = vst.msk [vmem:[#allocation4] sm:$0xff] %vm40_vm0, %v411_v0  ;;  %46 = vst.msk [vmem:[#allocation4 + $0x8] sm:$0xff] %vm40_vm0, %v411_v0  ;;  %380 = vmatpush3.bf16.xpose.msra.mxu0 %v74_v2  ;;  %v147_v5 = vsel %vm40_vm0, %v407_v3, 0  ;;  %v144_v8 = vsel %vm40_vm0, %v409_v6, 0  ;;  %v49_v9 = vld [vmem:[%s569_s0] sm:$0xff]  ;;  %v50_v10 = vld [vmem:[%s569_s0 + $0x8] sm:$0xff] }
   0x4   :  { %381 = vmatprep.subr.bf16.mxu0 %v411_v0  ;;  %388 = vmatpush3.bf16.xpose.msra.mxu1 %v147_v5  ;;  %v408_v11 = vld [vmem:[%s568_s5 + $0x8] sm:$0xff]   ;;  %v123_v12 = vld [vmem:[%s570_s1] sm:$0xff]  ;;  %v51_v14 = vpack.c.bf16 %v50_v10, %v49_v9 }
   0x5   :  { %389 = vmatprep.subr.bf16.mxu1 %v411_v0  ;;  %v124_v13 = vld [vmem:[%s570_s1 + $0x8] sm:$0xff]  ;;  %v220_v15 = vsel %vm40_vm0, %v408_v11, 0  ;;  %v410_v17 = vld [vmem:[%s568_s5] sm:$0xff]  }
   0x6   :  { %v125_v16 = vpack.c.bf16 %v124_v13, %v123_v12  ;;  %v217_v18 = vsel %vm40_vm0, %v410_v17, 0  ;;  %v196_v19 = vld [vmem:[%s571_s2] sm:$0xff]  ;;  %v197_v20 = vld [vmem:[%s571_s2 + $0x8] sm:$0xff] }
   0x7   :  { %v198_v21 = vpack.c.bf16 %v197_v20, %v196_v19  ;;  %v355_v37 = vld [vmem:[%s572_s6] ss:$0 sm:$0xff] }
   0x8   :  { %v47_v22 = vld [vmem:[#allocation2] sm:$0xff]  ;;  %v48_v27 = vld [vmem:[#allocation2 + $0x8] sm:$0xff] }
   0x9   :  { %v121_v24 = vld [vmem:[#allocation3] sm:$0xff]  ;;  %v122_v32 = vld [vmem:[#allocation3 + $0x8] sm:$0xff]  ;;  %v358_v40 = vld [vmem:[%s573_s7] ss:$0 sm:$0xff] }
   0xa   :  { %v194_v46 = vld [vmem:[#allocation4] sm:$0xff]  ;;  %v195_v55 = vld [vmem:[#allocation4 + $0x8] sm:$0xff] }
   0xb   :  { %382 = vmatpush3.bf16.xpose.msra.mxu0 %v71_v7  ;;  %v361_v60 = vld [vmem:[%s576_s8] ss:$0 sm:$0xff] }
   0xc   :  { %395 = vmatprep.subr.bf16.mxu0 %v411_v0  ;;  %390 = vmatpush3.bf16.xpose.msra.mxu1 %v144_v8 }
  0x12   :  { %384 = vmatmul.mubr.msk.bf16.vlgmr.msra.gmra.mxu0 %vm40_vm0, %v51_v14 }
  0x13   :  { %396 = vmatpush3.bf16.xpose.msra.mxu0 %v220_v15  ;;  %399 = vmatprep.mubr.msk.bf16.mxu0 %vm412_vm1, %v411_v0 }
  0x14   :  { %397 = vmatprep.subr.bf16.mxu0 %v411_v0  ;;  %392 = vmatmul.mubr.msk.bf16.vlgmr.msra.gmra.mxu1 %vm40_vm0, %v125_v16 }
  0x1b   :  { %398 = vmatpush3.bf16.xpose.msra.mxu0 %v217_v18 }
  0x22   :  { %400 = vmatmul.mubr.msk.bf16.vlgmr.msra.gmra.mxu0 %vm40_vm0, %v198_v21 }
  0xd2   :  { %v110_v23 = vpop.f32.mrf.mxu0 }
  0xd3   :  { %v117_v25 = vadd.f32 %v110_v23, %v47_v22 }
  0xd4   :  { %v385_v26 = vpop.f32.mrf.mxu0  ;;  %v183_v28 = vpop.f32.mrf.mxu1 }
  0xd5   :  { %119 = vst.msk [vmem:[#allocation2] sm:$0xff] %vm40_vm0, %v117_v25  ;;  %v190_v29 = vadd.f32 %v183_v28, %v121_v24 }
  0xd6   :  { %v113_v30 = vpop.f32.mrf.mxu0  ;;  %v393_v31 = vpop.f32.mrf.mxu1 }
  0xd7   :  { %v118_v33 = vadd.f32 %v113_v30, %v48_v27  ;;  %192 = vst.msk [vmem:[#allocation3] sm:$0xff] %vm40_vm0, %v190_v29 }
  0xd8   :  { %v386_v34 = vpop.f32.mrf.mxu0  ;;  %v186_v35 = vpop.f32.mrf.mxu1 }
  0xd9   :  { %120 = vst.msk [vmem:[#allocation2 + $0x8] sm:$0xff] %vm40_vm0, %v118_v33  ;;  %v191_v36 = vadd.f32 %v186_v35, %v122_v32 }
  0xda   :  { %v394_v38 = vpop.f32.mrf.mxu1 }
  0xdb   :  { %193 = vst.msk [vmem:[#allocation3 + $0x8] sm:$0xff] %vm40_vm0, %v191_v36 }
  0xdc   :  { %v270_v39 = vld [vmem:[#allocation2] sm:$0xff] }
  0xdd   :  { %v279_v41 = vadd.f32 %v355_v37, %v270_v39 }
  0xde   :  { %v292_v42 = vld [vmem:[#allocation3] sm:$0xff] }
  0xdf   :  { %v364_v43 = vpack.c.bf16 %v279_v41, %v279_v41  ;;  %v301_v44 = vadd.f32 %v358_v40, %v292_v42 }
  0xe0   :  { %v271_v45 = vld [vmem:[#allocation2 + $0x8] sm:$0xff] }
  0xe1   :  { %290 = vst.msk [vmem:[%s574_s9] sm:$0xf] %vm289_vm2, %v364_v43  ;;  %v280_v47 = vadd.f32 %v355_v37, %v271_v45  ;;  %v366_v48 = vpack.c.bf16 %v301_v44, %v301_v44 }
  0xe2   :  { %v293_v49 = vld [vmem:[#allocation3 + $0x8] sm:$0xff]  ;;  %v256_v50 = vpop.f32.mrf.mxu0 }
  0xe3   :  { %v365_v51 = vpack.c.bf16 %v280_v47, %v280_v47  ;;  %311 = vst.msk [vmem:[%s575_s10] sm:$0xf] %vm289_vm2, %v366_v48  ;;  %v302_v52 = vadd.f32 %v358_v40, %v293_v49  ;;  %v263_v53 = vadd.f32 %v256_v50, %v194_v46 }
  0xe4   :  { %v401_v54 = vpop.f32.mrf.mxu0 }
  0xe5   :  { %291 = vst.msk [vmem:[%s574_s9 + $0x4] sm:$0xf] %vm289_vm2, %v365_v51  ;;  %v367_v56 = vpack.c.bf16 %v302_v52, %v302_v52 }
  0xe6   :  { %265 = vst.msk [vmem:[#allocation4] sm:$0xff] %vm40_vm0, %v263_v53  ;;  %v259_v57 = vpop.f32.mrf.mxu0 }
  0xe7   :  { %312 = vst.msk [vmem:[%s575_s10 + $0x4] sm:$0xf] %vm289_vm2, %v367_v56  ;;  %v264_v58 = vadd.f32 %v259_v57, %v195_v55 }
  0xe8   :  { %v402_v59 = vpop.f32.mrf.mxu0 }
  0xe9   :  { %266 = vst.msk [vmem:[#allocation4 + $0x8] sm:$0xff] %vm40_vm0, %v264_v58 }
  0xed   :  { %v313_v61 = vld [vmem:[#allocation4] sm:$0xff] }
  0xee   :  { %v322_v62 = vadd.f32 %v361_v60, %v313_v61 }
  0xf0   :  { %v368_v63 = vpack.c.bf16 %v322_v62, %v322_v62  ;;  %v314_v0 = vld [vmem:[#allocation4 + $0x8] sm:$0xff] }
  0xf1   :  { %v323_v1 = vadd.f32 %v361_v60, %v314_v0 }
  0xf2   :  { %332 = vst.msk [vmem:[%s577_s11] sm:$0xf] %vm289_vm2, %v368_v63 }
  0xf3   :  { %v369_v2 = vpack.c.bf16 %v323_v1, %v323_v1 }
  0xf5   :  { %333 = vst.msk [vmem:[%s577_s11 + $0x4] sm:$0xf] %vm289_vm2, %v369_v2 }

// kernel: transformer_block_forward.6
= control target key start
LH: loop header
LB: loop body
LE: loop exit
PB: predicated region body
PF: predicated region fallthrough
CT: control target
= control target key end

     0   :  { %vm28_vm0 = vcmask 261120   ;;  %v218_v0 = vmov 0.0   ;;  %vm219_vm1 = vmmov 0   ;;  %vm180_vm2 = vcmask 257024   ;;  %s296_s1 = inlined_call_operand.vmem [shape: bf16[32,32], index: 1, kind: input, shape index: {}]   ;;  %s297_s0 = inlined_call_operand.vmem [shape: bf16[16,32], index: 0, kind: input, shape index: {}]   ;;  %s298_s2 = inlined_call_operand.vmem [shape: f32[1,32], index: 2, kind: input, shape index: {}]   ;;  %s299_s3 = inlined_call_operand.vmem [shape: f32[16,32], index: 3, kind: input, shape index: {}]   ;;  %s300_s4 = inlined_call_operand.vmem [shape: f32[1,32], index: 4, kind: input, shape index: {}]   ;;  %s301_s5 = inlined_call_operand.vmem [shape: f32[1,32], index: 5, kind: input, shape index: {}]   ;;  %s302_s6 = inlined_call_operand.vmem [shape: bf16[16,32], index: 6, kind: output, shape index: {}]  }
   0x1   :  { %201 = vmatprep.subr.bf16.mxu0 %v218_v0  ;;  %v211_v1 = vld [vmem:[%s296_s1 + $0x8] sm:$0xff]   ;;  %29 = vst.msk [vmem:[#allocation2] sm:$0xff] %vm28_vm0, %v218_v0  ;;  %30 = vst.msk [vmem:[#allocation2 + $0x8] sm:$0xff] %vm28_vm0, %v218_v0  ;;  %205 = vmatprep.mubr.msk.bf16.mxu0 %vm219_vm1, %v218_v0  ;;  %v212_v3 = vld [vmem:[%s296_s1] sm:$0xff]  }
   0x2   :  { %v62_v2 = vsel %vm28_vm0, %v211_v1, 0  ;;  %v59_v4 = vsel %vm28_vm0, %v212_v3, 0  ;;  %v213_v5 = vld [vmem:[%s297_s0] sm:$0xff]   ;;  %v124_v20 = vld [vmem:[%s299_s3 + $0x8] sm:$0xff] }
   0x3   :  { %202 = vmatpush3.bf16.xpose.msra.mxu0 %v62_v2  ;;  %v191_v14 = vld [vmem:[%s298_s2] ss:$0 sm:$0xff] }
   0x4   :  { %203 = vmatprep.subr.bf16.mxu0 %v218_v0  ;;  %v123_v16 = vld [vmem:[%s299_s3] sm:$0xff] }
   0x5   :  { %v192_v42 = vld [vmem:[%s300_s4] ss:$0 sm:$0xff] }
   0x6   :  { %v193_v44 = vld [vmem:[%s301_s5] ss:$0 sm:$0xff] }
   0x8   :  { %v31_v6 = vld [vmem:[#allocation2] sm:$0xff]  ;;  %v32_v10 = vld [vmem:[#allocation2 + $0x8] sm:$0xff] }
   0xb   :  { %204 = vmatpush3.bf16.xpose.msra.mxu0 %v59_v4 }
  0x12   :  { %206 = vmatmul.mubr.msk.bf16.vlgmr.msra.gmra.mxu0 %vm28_vm0, %v213_v5 }
  0xd2   :  { %v98_v7 = vpop.f32.mrf.mxu0 }
  0xd3   :  { %v105_v8 = vadd.f32 %v98_v7, %v31_v6 }
  0xd4   :  { %v207_v9 = vpop.f32.mrf.mxu0 }
  0xd5   :  { %107 = vst.msk [vmem:[#allocation2] sm:$0xff] %vm28_vm0, %v105_v8 }
  0xd6   :  { %v101_v11 = vpop.f32.mrf.mxu0 }
  0xd7   :  { %v106_v12 = vadd.f32 %v101_v11, %v32_v10 }
  0xd8   :  { %v208_v13 = vpop.f32.mrf.mxu0 }
  0xd9   :  { %108 = vst.msk [vmem:[#allocation2 + $0x8] sm:$0xff] %vm28_vm0, %v106_v12 }
  0xdc   :  { %v112_v15 = vld [vmem:[#allocation2] sm:$0xff] }
  0xdd   :  { %v121_v17 = vadd.f32 %v191_v14, %v112_v15 }
  0xdf   :  { %v125_v18 = vadd.f32 %v123_v16, %v121_v17 }
  0xe0   :  { %v113_v19 = vld [vmem:[#allocation2 + $0x8] sm:$0xff] }
  0xe1   :  { %v127_v21 = vsel %vm28_vm0, %v125_v18, 0.0  ;;  %v122_v22 = vadd.f32 %v191_v14, %v113_v19 }
  0xe2   :  { %128 = vadd.xlane.f32.xlu0 %v127_v21 }
  0xe3   :  { %v126_v23 = vadd.f32 %v124_v20, %v122_v22 }
  0xe5   :  { %v130_v24 = vsel %vm28_vm0, %v126_v23, 0.0 }
  0xe6   :  { %131 = vadd.xlane.f32.xlu0 %v130_v24 }
 0x16b   :  { %v129_v25 = vpop.xlane.xlu0 %128 }
 0x16c   :  { %v134_v26 = vmul.f32 0.03125, %v129_v25 }
 0x16e   :  { %v136_v27 = vsub.f32 %v125_v18, %v134_v26 }
 0x16f   :  { %v132_v28 = vpop.xlane.xlu0 %131 }
 0x170   :  { %v135_v29 = vmul.f32 0.03125, %v132_v28  ;;  %v138_v30 = vmul.f32 %v136_v27, %v136_v27 }
 0x172   :  { %v137_v31 = vsub.f32 %v126_v23, %v135_v29  ;;  %v140_v32 = vsel %vm28_vm0, %v138_v30, 0.0 }
 0x173   :  { %141 = vadd.xlane.f32.xlu1 %v140_v32 }
 0x174   :  { %v139_v33 = vmul.f32 %v137_v31, %v137_v31 }
 0x176   :  { %v143_v34 = vsel %vm28_vm0, %v139_v33, 0.0 }
 0x177   :  { %144 = vadd.xlane.f32.xlu1 %v143_v34 }
 0x1fc   :  { %v142_v35 = vpop.xlane.xlu1 %141 }
 0x1fd   :  { %v146_v36 = vmul.f32 0.03125, %v142_v35 }
 0x1ff   :  { %v148_v37 = vadd.f32 1e-05, %v146_v36 }
 0x200   :  { %v145_v38 = vpop.xlane.xlu1 %144 }
 0x201   :  { %214 = vrsqrt.f32 %v148_v37  ;;  %v147_v39 = vmul.f32 0.03125, %v145_v38 }
 0x203   :  { %v149_v40 = vadd.f32 1e-05, %v147_v39 }
 0x205   :  { %216 = vrsqrt.f32 %v149_v40 }
 0x20e   :  { %v215_v41 = vpop.eup %214 }
 0x20f   :  { %v152_v43 = vmul.f32 %v215_v41, %v136_v27 }
 0x211   :  { %v161_v45 = vmul.f32 %v192_v42, %v152_v43 }
 0x212   :  { %v217_v46 = vpop.eup %216 }
 0x213   :  { %v170_v47 = vadd.f32 %v193_v44, %v161_v45  ;;  %v153_v48 = vmul.f32 %v217_v46, %v137_v31 }
 0x215   :  { %v196_v49 = vpack.c.bf16 %v170_v47, %v170_v47  ;;  %v162_v50 = vmul.f32 %v192_v42, %v153_v48 }
 0x217   :  { %181 = vst.msk [vmem:[%s302_s6] sm:$0xf] %vm180_vm2, %v196_v49  ;;  %v171_v51 = vadd.f32 %v193_v44, %v162_v50 }
 0x219   :  { %v197_v52 = vpack.c.bf16 %v171_v51, %v171_v51 }
 0x21b   :  { %182 = vst.msk [vmem:[%s302_s6 + $0x4] sm:$0xf] %vm180_vm2, %v197_v52 }

// kernel: transformer_block_forward.7
= control target key start
LH: loop header
LB: loop body
LE: loop exit
PB: predicated region body
PF: predicated region fallthrough
CT: control target
= control target key end

     0   :  { %vm1002_vm0 = vcmask 261120   ;;  %s3907_s0 = inlined_call_operand.vmem [shape: bf16[16,32], index: 0, kind: input, shape index: {}, may-alias: {0,5}]   ;;  %s3908_s1 = inlined_call_operand.vmem [shape: bf16[2048,32], index: 1, kind: input, shape index: {}]   ;;  %s3909_s2 = inlined_call_operand.vmem [shape: f32[1,2048], index: 2, kind: input, shape index: {}]   ;;  %s3910_s3 = inlined_call_operand.vmem [shape: bf16[32,2048], index: 3, kind: input, shape index: {}]   ;;  %s3911_s4 = inlined_call_operand.vmem [shape: f32[1,32], index: 4, kind: input, shape index: {}]   ;;  %s3912_s5 = inlined_call_operand.vmem [shape: bf16[16,32], index: 5, kind: input, shape index: {}, may-alias: {0,5}]   ;;  %s3913_s6 = inlined_call_operand.vmem [shape: f32[1,32], index: 6, kind: input, shape index: {}]   ;;  %s3914_s7 = inlined_call_operand.vmem [shape: f32[1,32], index: 7, kind: input, shape index: {}]   ;;  %s3915_s8 = inlined_call_operand.hbm [shape: f32[16,32], index: 8, kind: output, shape index: {}]  }
   0x1   :  { %v2980_v0 = vld [vmem:[%s3908_s1 + $0x78] sm:$0xff]   ;;  %v2984_v5 = vld [vmem:[%s3908_s1 + $0x70] sm:$0xff]   ;;  %v2988_v11 = vld [vmem:[%s3908_s1 + $0x68] sm:$0xff]  }
   0x2   :  { %v2981_v1 = vld [vmem:[%s3908_s1 + $0xf8] sm:$0xff]   ;;  %2913 = vmatprep.subr.msk.bf16.mxu0 %vm1002_vm0, %v2980_v0  ;;  %v2985_v7 = vld [vmem:[%s3908_s1 + $0xf0] sm:$0xff]   ;;  %v2989_v13 = vld [vmem:[%s3908_s1 + $0xe8] sm:$0xff]  }
   0x3   :  { %v2982_v2 = vld [vmem:[%s3908_s1 + $0x38] sm:$0xff]   ;;  %2921 = vmatprep.subr.msk.bf16.mxu1 %vm1002_vm0, %v2981_v1  ;;  %v2986_v8 = vld [vmem:[%s3908_s1 + $0x30] sm:$0xff]   ;;  %v2990_v14 = vld [vmem:[%s3908_s1 + $0x28] sm:$0xff]  }
   0x4   :  { %v2983_v3 = vld [vmem:[%s3908_s1 + $0xb8] sm:$0xff]   ;;  %v1028_v4 = vsel %vm1002_vm0, %v2982_v2, 0  ;;  %v2987_v9 = vld [vmem:[%s3908_s1 + $0xb0] sm:$0xff]   ;;  %v1025_v10 = vsel %vm1002_vm0, %v2986_v8, 0  ;;  %v2991_v15 = vld [vmem:[%s3908_s1 + $0xa8] sm:$0xff]   ;;  %v1022_v16 = vsel %vm1002_vm0, %v2990_v14, 0 }
   0x5   :  { %2770 = vmatpush3.bf16.xpose.msra.mxu0 %v1028_v4  ;;  %v1076_v6 = vsel %vm1002_vm0, %v2983_v3, 0  ;;  %v1073_v12 = vsel %vm1002_vm0, %v2987_v9, 0  ;;  %v2992_v17 = vld [vmem:[%s3908_s1 + $0x60] sm:$0xff]   ;;  %v1070_v18 = vsel %vm1002_vm0, %v2991_v15, 0  ;;  %v2996_v23 = vld [vmem:[%s3908_s1 + $0x58] sm:$0xff]   ;;  %v3000_v30 = vld [vmem:[%s3908_s1 + $0x50] sm:$0xff]  }
   0x6   :  { %2788 = vmatpush3.bf16.xpose.msra.mxu1 %v1076_v6  ;;  %2914 = vmatprep.subr.msk.bf16.mxu0 %vm1002_vm0, %v2984_v5  ;;  %v2993_v19 = vld [vmem:[%s3908_s1 + $0xe0] sm:$0xff]   ;;  %v2997_v25 = vld [vmem:[%s3908_s1 + $0xd8] sm:$0xff]   ;;  %v3001_v32 = vld [vmem:[%s3908_s1 + $0xd0] sm:$0xff]  }
   0x7   :  { %2922 = vmatprep.subr.msk.bf16.mxu1 %vm1002_vm0, %v2985_v7  ;;  %v2994_v20 = vld [vmem:[%s3908_s1 + $0x20] sm:$0xff]   ;;  %v2998_v26 = vld [vmem:[%s3908_s1 + $0x18] sm:$0xff]   ;;  %v3002_v33 = vld [vmem:[%s3908_s1 + $0x10] sm:$0xff]  }
   0x8   :  { %v2995_v21 = vld [vmem:[%s3908_s1 + $0xa0] sm:$0xff]   ;;  %v1019_v22 = vsel %vm1002_vm0, %v2994_v20, 0  ;;  %v2999_v27 = vld [vmem:[%s3908_s1 + $0x98] sm:$0xff]   ;;  %v1016_v29 = vsel %vm1002_vm0, %v2998_v26, 0  ;;  %v3003_v34 = vld [vmem:[%s3908_s1 + $0x90] sm:$0xff]   ;;  %v1013_v35 = vsel %vm1002_vm0, %v3002_v33, 0 }
   0x9   :  { %v1067_v24 = vsel %vm1002_vm0, %v2995_v21, 0  ;;  %v3264_v28 = vld [vmem:[%s3907_s0] sm:$0xff]   ;;  %v1064_v31 = vsel %vm1002_vm0, %v2999_v27, 0  ;;  %v3004_v36 = vld [vmem:[%s3908_s1 + $0x48] sm:$0xff]   ;;  %v1061_v37 = vsel %vm1002_vm0, %v3003_v34, 0  ;;  %v3013_v48 = vld [vmem:[%s3908_s1 + $0x178] sm:$0xff]  }
   0xa   :  { %2785 = vmatprep.mubr.msk.bf16.mxu0 %vm1002_vm0, %v3264_v28  ;;  %2803 = vmatprep.mubr.msk.bf16.mxu1 %vm1002_vm0, %v3264_v28  ;;  %v3005_v38 = vld [vmem:[%s3908_s1 + $0xc8] sm:$0xff]   ;;  %v3008_v42 = vld [vmem:[%s3908_s1 + $0x40] sm:$0xff]   ;;  %v3014_v50 = vld [vmem:[%s3908_s1 + $0x1f8] sm:$0xff]  }
   0xb   :  { %v3006_v39 = vld [vmem:[%s3908_s1 + $0x8] sm:$0xff]   ;;  %v3009_v44 = vld [vmem:[%s3908_s1 + $0xc0] sm:$0xff]   ;;  %v3015_v51 = vld [vmem:[%s3908_s1 + $0x138] sm:$0xff]  }
   0xc   :  { %v3007_v40 = vld [vmem:[%s3908_s1 + $0x88] sm:$0xff]   ;;  %v1010_v41 = vsel %vm1002_vm0, %v3006_v39, 0  ;;  %v3010_v45 = vld [vmem:[%s3908_s1] sm:$0xff]   ;;  %v3016_v52 = vld [vmem:[%s3908_s1 + $0x1b8] sm:$0xff]   ;;  %v1124_v53 = vsel %vm1002_vm0, %v3015_v51, 0 }
   0xd   :  { %2772 = vmatpush3.bf16.xpose.msra.mxu0 %v1025_v10  ;;  %v1058_v43 = vsel %vm1002_vm0, %v3007_v40, 0  ;;  %v3011_v46 = vld [vmem:[%s3908_s1 + $0x80] sm:$0xff]   ;;  %v1007_v47 = vsel %vm1002_vm0, %v3010_v45, 0  ;;  %v3017_v54 = vld [vmem:[%s3908_s1 + $0x170] sm:$0xff]   ;;  %v1172_v55 = vsel %vm1002_vm0, %v3016_v52, 0  ;;  %v3021_v60 = vld [vmem:[%s3908_s1 + $0x168] sm:$0xff]  }
   0xe   :  { %2790 = vmatpush3.bf16.xpose.msra.mxu1 %v1073_v12  ;;  %2915 = vmatprep.subr.msk.bf16.mxu0 %vm1002_vm0, %v2988_v11  ;;  %v1055_v49 = vsel %vm1002_vm0, %v3011_v46, 0  ;;  %v3018_v56 = vld [vmem:[%s3908_s1 + $0x1f0] sm:$0xff]   ;;  %v3022_v62 = vld [vmem:[%s3908_s1 + $0x1e8] sm:$0xff]   ;;  %v3025_v2 = vld [vmem:[%s3908_s1 + $0x160] sm:$0xff]  }
   0xf   :  { %2923 = vmatprep.subr.msk.bf16.mxu1 %vm1002_vm0, %v2989_v13  ;;  %v3019_v57 = vld [vmem:[%s3908_s1 + $0x130] sm:$0xff]   ;;  %v3023_v63 = vld [vmem:[%s3908_s1 + $0x128] sm:$0xff]   ;;  %v3026_v4 = vld [vmem:[%s3908_s1 + $0x1e0] sm:$0xff]  }
  0x10   :  { %v3020_v58 = vld [vmem:[%s3908_s1 + $0x1b0] sm:$0xff]   ;;  %v1121_v59 = vsel %vm1002_vm0, %v3019_v57, 0  ;;  %v3024_v0 = vld [vmem:[%s3908_s1 + $0x1a8] sm:$0xff]   ;;  %v1118_v1 = vsel %vm1002_vm0, %v3023_v63, 0  ;;  %v3027_v5 = vld [vmem:[%s3908_s1 + $0x120] sm:$0xff]  }
  0x11   :  { %v1169_v61 = vsel %vm1002_vm0, %v3020_v58, 0  ;;  %v1166_v3 = vsel %vm1002_vm0, %v3024_v0, 0  ;;  %v3028_v6 = vld [vmem:[%s3908_s1 + $0x1a0] sm:$0xff]   ;;  %v1115_v7 = vsel %vm1002_vm0, %v3027_v5, 0  ;;  %v3029_v8 = vld [vmem:[%s3908_s1 + $0x158] sm:$0xff]   ;;  %v3033_v14 = vld [vmem:[%s3908_s1 + $0x150] sm:$0xff]  }
  0x12   :  { %v1163_v9 = vsel %vm1002_vm0, %v3028_v6, 0  ;;  %v3030_v10 = vld [vmem:[%s3908_s1 + $0x1d8] sm:$0xff]   ;;  %v3037_v20 = vld [vmem:[%s3908_s1 + $0x148] sm:$0xff]   ;;  %v3041_v26 = vld [vmem:[%s3908_s1 + $0x140] sm:$0xff]  }
  0x13   :  { %v3031_v11 = vld [vmem:[%s3908_s1 + $0x118] sm:$0xff]  }
  0x14   :  { %v3032_v12 = vld [vmem:[%s3908_s1 + $0x198] sm:$0xff]   ;;  %v1112_v13 = vsel %vm1002_vm0, %v3031_v11, 0 }
  0x15   :  { %2774 = vmatpush3.bf16.xpose.msra.mxu0 %v1022_v16  ;;  %v1160_v15 = vsel %vm1002_vm0, %v3032_v12, 0  ;;  %v3034_v16 = vld [vmem:[%s3908_s1 + $0x1d0] sm:$0xff]   ;;  %v3045_v33 = vld [vmem:[%s3908_s1 + $0x278] sm:$0xff]  }
  0x16   :  { %2792 = vmatpush3.bf16.xpose.msra.mxu1 %v1070_v18  ;;  %2916 = vmatprep.subr.msk.bf16.mxu0 %vm1002_vm0, %v2992_v17  ;;  %v3035_v17 = vld [vmem:[%s3908_s1 + $0x110] sm:$0xff]  }
  0x17   :  { %2924 = vmatprep.subr.msk.bf16.mxu1 %vm1002_vm0, %v2993_v19  ;;  %v3036_v18 = vld [vmem:[%s3908_s1 + $0x190] sm:$0xff]   ;;  %v1109_v19 = vsel %vm1002_vm0, %v3035_v17, 0 }
  0x18   :  { %v1157_v21 = vsel %vm1002_vm0, %v3036_v18, 0 }
  0x1d   :  { %2776 = vmatpush3.bf16.xpose.msra.mxu0 %v1019_v22  ;;  %v3038_v22 = vld [vmem:[%s3908_s1 + $0x1c8] sm:$0xff]  }
  0x1e   :  { %2794 = vmatpush3.bf16.xpose.msra.mxu1 %v1067_v24  ;;  %2917 = vmatprep.subr.msk.bf16.mxu0 %vm1002_vm0, %v2996_v23  ;;  %v3039_v23 = vld [vmem:[%s3908_s1 + $0x108] sm:$0xff]  }
  0x1f   :  { %2925 = vmatprep.subr.msk.bf16.mxu1 %vm1002_vm0, %v2997_v25  ;;  %v3040_v24 = vld [vmem:[%s3908_s1 + $0x188] sm:$0xff]   ;;  %v1106_v25 = vsel %vm1002_vm0, %v3039_v23, 0 }
  0x20   :  { %v1154_v27 = vsel %vm1002_vm0, %v3040_v24, 0 }
  0x25   :  { %2778 = vmatpush3.bf16.xpose.msra.mxu0 %v1016_v29  ;;  %v3042_v29 = vld [vmem:[%s3908_s1 + $0x1c0] sm:$0xff]  }
  0x26   :  { %2796 = vmatpush3.bf16.xpose.msra.mxu1 %v1064_v31  ;;  %2918 = vmatprep.subr.msk.bf16.mxu0 %vm1002_vm0, %v3000_v30  ;;  %v3043_v30 = vld [vmem:[%s3908_s1 + $0x100] sm:$0xff]  }
  0x27   :  { %2926 = vmatprep.subr.msk.bf16.mxu1 %vm1002_vm0, %v3001_v32  ;;  %v3044_v31 = vld [vmem:[%s3908_s1 + $0x180] sm:$0xff]   ;;  %v1103_v32 = vsel %vm1002_vm0, %v3043_v30, 0 }
  0x28   :  { %v1151_v34 = vsel %vm1002_vm0, %v3044_v31, 0 }
  0x2d   :  { %2780 = vmatpush3.bf16.xpose.msra.mxu0 %v1013_v35  ;;  %v3046_v35 = vld [vmem:[%s3908_s1 + $0x2f8] sm:$0xff]  }
  0x2e   :  { %2798 = vmatpush3.bf16.xpose.msra.mxu1 %v1061_v37  ;;  %2919 = vmatprep.subr.msk.bf16.mxu0 %vm1002_vm0, %v3004_v36  ;;  %v3047_v36 = vld [vmem:[%s3908_s1 + $0x238] sm:$0xff]  }
  0x2f   :  { %2927 = vmatprep.subr.msk.bf16.mxu1 %vm1002_vm0, %v3005_v38  ;;  %v3048_v37 = vld [vmem:[%s3908_s1 + $0x2b8] sm:$0xff]  }
  0x35   :  { %2782 = vmatpush3.bf16.xpose.msra.mxu0 %v1010_v41 }
  0x36   :  { %2800 = vmatpush3.bf16.xpose.msra.mxu1 %v1058_v43  ;;  %2920 = vmatprep.subr.msk.bf16.mxu0 %vm1002_vm0, %v3008_v42 }
  0x37   :  { %2928 = vmatprep.subr.msk.bf16.mxu1 %vm1002_vm0, %v3009_v44 }
  0x3d   :  { %2784 = vmatpush3.bf16.xpose.msra.mxu0 %v1007_v47 }
  0x3e   :  { %2802 = vmatpush3.bf16.xpose.msra.mxu1 %v1055_v49  ;;  %2929 = vmatprep.subr.msk.bf16.mxu0 %vm1002_vm0, %v3013_v48 }
  0x3f   :  { %2937 = vmatprep.subr.msk.bf16.mxu1 %vm1002_vm0, %v3014_v50 }
  0x44   :  { %2786 = vmatmul.mubr.msk.bf16.vlgmr.msra.gmra.mxu0 %vm1002_vm0, %v3264_v28 }
  0x45   :  { %2804 = vmatmul.mubr.msk.bf16.vlgmr.msra.gmra.mxu1 %vm1002_vm0, %v3264_v28  ;;  %2806 = vmatpush3.bf16.xpose.msra.mxu0 %v1124_v53 }
  0x46   :  { %2824 = vmatpush3.bf16.xpose.msra.mxu1 %v1172_v55  ;;  %2930 = vmatprep.subr.msk.bf16.mxu0 %vm1002_vm0, %v3017_v54 }
  0x47   :  { %2938 = vmatprep.subr.msk.bf16.mxu1 %vm1002_vm0, %v3018_v56  ;;  %2821 = vmatprep.mubr.msk.bf16.mxu0 %vm1002_vm0, %v3264_v28 }
  0x48   :  { %2839 = vmatprep.mubr.msk.bf16.mxu1 %vm1002_vm0, %v3264_v28 }
  0x4d   :  { %2808 = vmatpush3.bf16.xpose.msra.mxu0 %v1121_v59 }
  0x4e   :  { %2826 = vmatpush3.bf16.xpose.msra.mxu1 %v1169_v61  ;;  %2931 = vmatprep.subr.msk.bf16.mxu0 %vm1002_vm0, %v3021_v60 }
  0x4f   :  { %2939 = vmatprep.subr.msk.bf16.mxu1 %vm1002_vm0, %v3022_v62 }
  0x55   :  { %2810 = vmatpush3.bf16.xpose.msra.mxu0 %v1118_v1 }
  0x56   :  { %2828 = vmatpush3.bf16.xpose.msra.mxu1 %v1166_v3  ;;  %2932 = vmatprep.subr.msk.bf16.mxu0 %vm1002_vm0, %v3025_v2 }
  0x57   :  { %2940 = vmatprep.subr.msk.bf16.mxu1 %vm1002_vm0, %v3026_v4 }
  0x5d   :  { %2812 = vmatpush3.bf16.xpose.msra.mxu0 %v1115_v7 }
  0x5e   :  { %2830 = vmatpush3.bf16.xpose.msra.mxu1 %v1163_v9  ;;  %2933 = vmatprep.subr.msk.bf16.mxu0 %vm1002_vm0, %v3029_v8 }
  0x5f   :  { %2941 = vmatprep.subr.msk.bf16.mxu1 %vm1002_vm0, %v3030_v10 }
  0x65   :  { %2814 = vmatpush3.bf16.xpose.msra.mxu0 %v1112_v13 }
  0x66   :  { %2832 = vmatpush3.bf16.xpose.msra.mxu1 %v1160_v15  ;;  %2934 = vmatprep.subr.msk.bf16.mxu0 %vm1002_vm0, %v3033_v14 }
  0x67   :  { %2942 = vmatprep.subr.msk.bf16.mxu1 %vm1002_vm0, %v3034_v16 }
  0x6d   :  { %2816 = vmatpush3.bf16.xpose.msra.mxu0 %v1109_v19 }
  0x6e   :  { %2834 = vmatpush3.bf16.xpose.msra.mxu1 %v1157_v21  ;;  %2935 = vmatprep.subr.msk.bf16.mxu0 %vm1002_vm0, %v3037_v20 }
  0x6f   :  { %2943 = vmatprep.subr.msk.bf16.mxu1 %vm1002_vm0, %v3038_v22 }
  0x75   :  { %2818 = vmatpush3.bf16.xpose.msra.mxu0 %v1106_v25 }
  0x76   :  { %2836 = vmatpush3.bf16.xpose.msra.mxu1 %v1154_v27  ;;  %2936 = vmatprep.subr.msk.bf16.mxu0 %vm1002_vm0, %v3041_v26 }
  0x77   :  { %2944 = vmatprep.subr.msk.bf16.mxu1 %vm1002_vm0, %v3042_v29 }
  0x7d   :  { %2820 = vmatpush3.bf16.xpose.msra.mxu0 %v1103_v32 }
  0x7e   :  { %2838 = vmatpush3.bf16.xpose.msra.mxu1 %v1151_v34  ;;  %2945 = vmatprep.subr.msk.bf16.mxu0 %vm1002_vm0, %v3045_v33 }
  0x7f   :  { %2953 = vmatprep.subr.msk.bf16.mxu1 %vm1002_vm0, %v3046_v35 }
  0x80   :  { %13 = vsyncpa [#allocation4], 0  ;;  %v1220_v38 = vsel %vm1002_vm0, %v3047_v36, 0  ;;  %v3049_v39 = vld [vmem:[%s3908_s1 + $0x270] sm:$0xff]   ;;  %v1268_v40 = vsel %vm1002_vm0, %v3048_v37, 0  ;;  %v3053_v45 = vld [vmem:[%s3908_s1 + $0x268] sm:$0xff]  }
  0x81   :  { %v3050_v41 = vld [vmem:[%s3908_s1 + $0x2f0] sm:$0xff]   ;;  %v3054_v47 = vld [vmem:[%s3908_s1 + $0x2e8] sm:$0xff]   ;;  %v3057_v51 = vld [vmem:[%s3908_s1 + $0x260] sm:$0xff]   ;;  %s3135_s11 = smov [#allocation3]  }
  0x82   :  { %v3051_v42 = vld [vmem:[%s3908_s1 + $0x230] sm:$0xff]   ;;  %v3055_v48 = vld [vmem:[%s3908_s1 + $0x228] sm:$0xff]   ;;  %v3058_v53 = vld [vmem:[%s3908_s1 + $0x2e0] sm:$0xff]   ;;  %s2582_s12 = sshll.u32 %s3135_s11, 4  ;;  %s2583_s12 = int_to_ptr.vmem [resolvable:$true] %s2582_s12 }
  0x83   :  { %v3052_v43 = vld [vmem:[%s3908_s1 + $0x2b0] sm:$0xff]   ;;  %v1217_v44 = vsel %vm1002_vm0, %v3051_v42, 0  ;;  %v3056_v49 = vld [vmem:[%s3908_s1 + $0x2a8] sm:$0xff]   ;;  %v1214_v50 = vsel %vm1002_vm0, %v3055_v48, 0  ;;  %v3059_v54 = vld [vmem:[%s3908_s1 + $0x220] sm:$0xff]   ;;  %s3113_s13 = scalar_lea.vmem %s2583_s12, 256  ;;  %p3118_p1 = scmp.lt.s32.totalorder %s2583_s12, %s2583_s12 }
  0x84   :  { %2822 = vmatmul.mubr.msk.bf16.vlgmr.msra.gmra.mxu0 %vm1002_vm0, %v3264_v28  ;;  %v1265_v46 = vsel %vm1002_vm0, %v3052_v43, 0  ;;  %v1262_v52 = vsel %vm1002_vm0, %v3056_v49, 0  ;;  %v3060_v55 = vld [vmem:[%s3908_s1 + $0x2a0] sm:$0xff]   ;;  %v1211_v56 = vsel %vm1002_vm0, %v3059_v54, 0  ;;  %v3061_v57 = vld [vmem:[%s3908_s1 + $0x258] sm:$0xff]   ;;  %v3065_v63 = vld [vmem:[%s3908_s1 + $0x250] sm:$0xff]   ;;  %p3114_p0 = scmp.ne.s32.totalorder %s2583_s12, %s3113_s13  ;;  %p3119_p2 = scmp.lt.s32.totalorder %s3113_s13, %s3113_s13 }
  0x85   :  { %2840 = vmatmul.mubr.msk.bf16.vlgmr.msra.gmra.mxu1 %vm1002_vm0, %v3264_v28  ;;  %2842 = vmatpush3.bf16.xpose.msra.mxu0 %v1220_v38  ;;  %v1259_v58 = vsel %vm1002_vm0, %v3060_v55, 0  ;;  %v3062_v59 = vld [vmem:[%s3908_s1 + $0x2d8] sm:$0xff]   ;;  %v3066_v1 = vld [vmem:[%s3908_s1 + $0x2d0] sm:$0xff]   ;;  %v3069_v5 = vld [vmem:[%s3908_s1 + $0x248] sm:$0xff]  }
  0x86   :  { %2860 = vmatpush3.bf16.xpose.msra.mxu1 %v1268_v40  ;;  %2946 = vmatprep.subr.msk.bf16.mxu0 %vm1002_vm0, %v3049_v39  ;;  %v3063_v60 = vld [vmem:[%s3908_s1 + $0x218] sm:$0xff]   ;;  %v3067_v2 = vld [vmem:[%s3908_s1 + $0x210] sm:$0xff]   ;;  %v3070_v7 = vld [vmem:[%s3908_s1 + $0x2c8] sm:$0xff]   ;;  %p3120_p3 = por %p3119_p2, %p3118_p1 }
  0x87   :  { %2954 = vmatprep.subr.msk.bf16.mxu1 %vm1002_vm0, %v3050_v41  ;;  %2857 = vmatprep.mubr.msk.bf16.mxu0 %vm1002_vm0, %v3264_v28  ;;  %v3064_v61 = vld [vmem:[%s3908_s1 + $0x298] sm:$0xff]   ;;  %v1208_v62 = vsel %vm1002_vm0, %v3063_v60, 0  ;;  %v3068_v3 = vld [vmem:[%s3908_s1 + $0x290] sm:$0xff]   ;;  %v1205_v4 = vsel %vm1002_vm0, %v3067_v2, 0  ;;  %v3071_v8 = vld [vmem:[%s3908_s1 + $0x208] sm:$0xff]  }
  0x88   :  { %2875 = vmatprep.mubr.msk.bf16.mxu1 %vm1002_vm0, %v3264_v28  ;;  %v1256_v0 = vsel %vm1002_vm0, %v3064_v61, 0  ;;  %v1253_v6 = vsel %vm1002_vm0, %v3068_v3, 0  ;;  %v3072_v9 = vld [vmem:[%s3908_s1 + $0x288] sm:$0xff]   ;;  %v1202_v10 = vsel %vm1002_vm0, %v3071_v8, 0  ;;  %v3073_v11 = vld [vmem:[%s3908_s1 + $0x240] sm:$0xff]   ;;  %v3077_v17 = vld [vmem:[%s3908_s1 + $0x378] sm:$0xff]   ;;  %p3121_p4 = pnand %p3120_p3, %p3114_p0 }
  0x89   :  { %v1250_v12 = vsel %vm1002_vm0, %v3072_v9, 0  ;;  %v3074_v13 = vld [vmem:[%s3908_s1 + $0x2c0] sm:$0xff]   ;;  %v3078_v19 = vld [vmem:[%s3908_s1 + $0x3f8] sm:$0xff]   ;;  %v3081_v23 = vld [vmem:[%s3908_s1 + $0x370] sm:$0xff]  }
  0x8a   :  { %v3075_v14 = vld [vmem:[%s3908_s1 + $0x200] sm:$0xff]   ;;  %v3079_v20 = vld [vmem:[%s3908_s1 + $0x338] sm:$0xff]   ;;  %v3082_v25 = vld [vmem:[%s3908_s1 + $0x3f0] sm:$0xff]  }
  0x8b   :  { %v3076_v15 = vld [vmem:[%s3908_s1 + $0x280] sm:$0xff]   ;;  %v1199_v16 = vsel %vm1002_vm0, %v3075_v14, 0  ;;  %v3080_v21 = vld [vmem:[%s3908_s1 + $0x3b8] sm:$0xff]   ;;  %v1316_v22 = vsel %vm1002_vm0, %v3079_v20, 0  ;;  %v3083_v26 = vld [vmem:[%s3908_s1 + $0x330] sm:$0xff]  }
  0x8c   :  { %v1247_v18 = vsel %vm1002_vm0, %v3076_v15, 0  ;;  %v1364_v24 = vsel %vm1002_vm0, %v3080_v21, 0  ;;  %v3084_v27 = vld [vmem:[%s3908_s1 + $0x3b0] sm:$0xff]   ;;  %v1313_v29 = vsel %vm1002_vm0, %v3083_v26, 0  ;;  %v3085_v30 = vld [vmem:[%s3908_s1 + $0x368] sm:$0xff]   ;;  %v3089_v36 = vld [vmem:[%s3908_s1 + $0x360] sm:$0xff]  }
  0x8d   :  { %2844 = vmatpush3.bf16.xpose.msra.mxu0 %v1217_v44  ;;  %v1361_v31 = vsel %vm1002_vm0, %v3084_v27, 0  ;;  %v3086_v32 = vld [vmem:[%s3908_s1 + $0x3e8] sm:$0xff]   ;;  %v3090_v38 = vld [vmem:[%s3908_s1 + $0x3e0] sm:$0xff]   ;;  %v3093_v42 = vld [vmem:[%s3908_s1 + $0x358] sm:$0xff]  }
  0x8e   :  { %2862 = vmatpush3.bf16.xpose.msra.mxu1 %v1265_v46  ;;  %2947 = vmatprep.subr.msk.bf16.mxu0 %vm1002_vm0, %v3053_v45  ;;  %v3087_v33 = vld [vmem:[%s3908_s1 + $0x328] sm:$0xff]   ;;  %v3091_v39 = vld [vmem:[%s3908_s1 + $0x320] sm:$0xff]   ;;  %v3094_v44 = vld [vmem:[%s3908_s1 + $0x3d8] sm:$0xff]  }
  0x8f   :  { %2955 = vmatprep.subr.msk.bf16.mxu1 %vm1002_vm0, %v3054_v47  ;;  %v3088_v34 = vld [vmem:[%s3908_s1 + $0x3a8] sm:$0xff]   ;;  %v1310_v35 = vsel %vm1002_vm0, %v3087_v33, 0  ;;  %v3092_v40 = vld [vmem:[%s3908_s1 + $0x3a0] sm:$0xff]   ;;  %v1307_v41 = vsel %vm1002_vm0, %v3091_v39, 0  ;;  %v3095_v45 = vld [vmem:[%s3908_s1 + $0x318] sm:$0xff]  }
  0x90   :  { %v1358_v37 = vsel %vm1002_vm0, %v3088_v34, 0  ;;  %v1355_v43 = vsel %vm1002_vm0, %v3092_v40, 0  ;;  %v3096_v46 = vld [vmem:[%s3908_s1 + $0x398] sm:$0xff]   ;;  %v1304_v47 = vsel %vm1002_vm0, %v3095_v45, 0  ;;  %v3097_v48 = vld [vmem:[%s3908_s1 + $0x350] sm:$0xff]   ;;  %v3101_v54 = vld [vmem:[%s3908_s1 + $0x348] sm:$0xff]  }
  0x91   :  { %v1352_v49 = vsel %vm1002_vm0, %v3096_v46, 0  ;;  %v3105_v60 = vld [vmem:[%s3908_s1 + $0x340] sm:$0xff]   ;;  %v2014_v3 = vld [vmem:[%s3910_s3 + $0x88] sm:$0xff] }
  0x92   :  { %v2021_v2 = vld [vmem:[%s3910_s3 + $0xc0] sm:$0xff]  ;;  %v2006_v14 = vld [vmem:[%s3910_s3 + $0x48] sm:$0xff] }
  0x95   :  { %2846 = vmatpush3.bf16.xpose.msra.mxu0 %v1214_v50  ;;  %v3098_v50 = vld [vmem:[%s3908_s1 + $0x3d0] sm:$0xff]  }
  0x96   :  { %2864 = vmatpush3.bf16.xpose.msra.mxu1 %v1262_v52  ;;  %2948 = vmatprep.subr.msk.bf16.mxu0 %vm1002_vm0, %v3057_v51  ;;  %v3099_v51 = vld [vmem:[%s3908_s1 + $0x310] sm:$0xff]  }
  0x97   :  { %2956 = vmatprep.subr.msk.bf16.mxu1 %vm1002_vm0, %v3058_v53  ;;  %v3100_v52 = vld [vmem:[%s3908_s1 + $0x390] sm:$0xff]   ;;  %v1301_v53 = vsel %vm1002_vm0, %v3099_v51, 0 }
  0x98   :  { %v1349_v55 = vsel %vm1002_vm0, %v3100_v52, 0 }
  0x9d   :  { %2848 = vmatpush3.bf16.xpose.msra.mxu0 %v1211_v56  ;;  %v3102_v56 = vld [vmem:[%s3908_s1 + $0x3c8] sm:$0xff]  }
  0x9e   :  { %2866 = vmatpush3.bf16.xpose.msra.mxu1 %v1259_v58  ;;  %2949 = vmatprep.subr.msk.bf16.mxu0 %vm1002_vm0, %v3061_v57  ;;  %v3103_v57 = vld [vmem:[%s3908_s1 + $0x308] sm:$0xff]  }
  0x9f   :  { %2957 = vmatprep.subr.msk.bf16.mxu1 %vm1002_vm0, %v3062_v59  ;;  %v3104_v58 = vld [vmem:[%s3908_s1 + $0x388] sm:$0xff]   ;;  %v1298_v59 = vsel %vm1002_vm0, %v3103_v57, 0 }
  0xa0   :  { %v1346_v61 = vsel %vm1002_vm0, %v3104_v58, 0 }
  0xa5   :  { %2850 = vmatpush3.bf16.xpose.msra.mxu0 %v1208_v62  ;;  %v3106_v62 = vld [vmem:[%s3908_s1 + $0x3c0] sm:$0xff]  }
  0xa6   :  { %2868 = vmatpush3.bf16.xpose.msra.mxu1 %v1256_v0  ;;  %2950 = vmatprep.subr.msk.bf16.mxu0 %vm1002_vm0, %v3065_v63  ;;  %v3107_v63 = vld [vmem:[%s3908_s1 + $0x300] sm:$0xff]  }
  0xa7   :  { %2958 = vmatprep.subr.msk.bf16.mxu1 %vm1002_vm0, %v3066_v1  ;;  %v3108_v0 = vld [vmem:[%s3908_s1 + $0x380] sm:$0xff]  }
  0xa8   :  { %v2013_v1 = vld [vmem:[%s3910_s3 + $0x80] sm:$0xff]  ;;  %v1343_v8 = vsel %vm1002_vm0, %v3108_v0, 0  ;;  %v2000_v0 = vld [vmem:[%s3910_s3 + $0x18] sm:$0xff] }
  0xa9   :  { %v2747_v15 = vcombine.low %v2013_v1, %v2021_v2 }
  0xad   :  { %2852 = vmatpush3.bf16.xpose.msra.mxu0 %v1205_v4  ;;  %v2022_v4 = vld [vmem:[%s3910_s3 + $0xc8] sm:$0xff] }
  0xae   :  { %2870 = vmatpush3.bf16.xpose.msra.mxu1 %v1253_v6  ;;  %2951 = vmatprep.subr.msk.bf16.mxu0 %vm1002_vm0, %v3069_v5  ;;  %v1837_v5 = vlaneseq  ;;  %v1295_v6 = vsel %vm1002_vm0, %v3107_v63, 0  ;;  %v2750_v9 = vcombine.high %v2014_v3, %v2022_v4 }
  0xaf   :  { %2959 = vmatprep.subr.msk.bf16.mxu1 %vm1002_vm0, %v3070_v7  ;;  %v2748_v7 = vcombine.high %v2013_v1, %v2021_v2  ;;  %v2008_v1 = vld [vmem:[%s3910_s3 + $0x58] sm:$0xff] }
  0xb5   :  { %2854 = vmatpush3.bf16.xpose.msra.mxu0 %v1202_v10  ;;  %v3740_v10 = vshrl.u32 %v1837_v5, 7 }
  0xb6   :  { %2872 = vmatpush3.bf16.xpose.msra.mxu1 %v1250_v12  ;;  %2952 = vmatprep.subr.msk.bf16.mxu0 %vm1002_vm0, %v3073_v11  ;;  %v1997_v11 = vld [vmem:[%s3910_s3] sm:$0xff] }
  0xb7   :  { %2960 = vmatprep.subr.msk.bf16.mxu1 %vm1002_vm0, %v3074_v13  ;;  %v2005_v12 = vld [vmem:[%s3910_s3 + $0x40] sm:$0xff]  ;;  %v1998_v13 = vld [vmem:[%s3910_s3 + $0x8] sm:$0xff]  ;;  %v1847_v21 = vsub.s32 2, %v3740_v10 }
  0xb8   :  { %v2732_v20 = vcombine.high %v1997_v11, %v2005_v12  ;;  %v2731_v39 = vcombine.low %v1997_v11, %v2005_v12  ;;  %v2018_v11 = vld [vmem:[%s3910_s3 + $0xa8] sm:$0xff] }
  0xb9   :  { %v2026_v12 = vld [vmem:[%s3910_s3 + $0xe8] sm:$0xff] }
  0xbd   :  { %2856 = vmatpush3.bf16.xpose.msra.mxu0 %v1199_v16  ;;  %v1843_v16 = vsub.s32 1, %v3740_v10 }
  0xbe   :  { %2874 = vmatpush3.bf16.xpose.msra.mxu1 %v1247_v18  ;;  %2961 = vmatprep.subr.msk.bf16.mxu0 %vm1002_vm0, %v3077_v17  ;;  %v3758_v17 = vld [vmem:[%s3909_s2] sm:$0xff]  ;;  %v2749_v18 = vcombine.low %v2014_v3, %v2022_v4 }
  0xbf   :  { %2969 = vmatprep.subr.msk.bf16.mxu1 %vm1002_vm0, %v3078_v19  ;;  %v1851_v19 = vsub.s32 3, %v3740_v10  ;;  %v1844_v26 = vrot.slane %v3758_v17, %v1843_v16 }
  0xc4   :  { %2858 = vmatmul.mubr.msk.bf16.vlgmr.msra.gmra.mxu0 %vm1002_vm0, %v3264_v28 }
  0xc5   :  { %2876 = vmatmul.mubr.msk.bf16.vlgmr.msra.gmra.mxu1 %vm1002_vm0, %v3264_v28  ;;  %2878 = vmatpush3.bf16.xpose.msra.mxu0 %v1316_v22  ;;  %v2734_v22 = vcombine.high %v1998_v13, %v2006_v14 }
  0xc6   :  { %2896 = vmatpush3.bf16.xpose.msra.mxu1 %v1364_v24  ;;  %2962 = vmatprep.subr.msk.bf16.mxu0 %vm1002_vm0, %v3081_v23  ;;  %v1839_v24 = vsub.s32 0, %v3740_v10 }
  0xc7   :  { %2970 = vmatprep.subr.msk.bf16.mxu1 %vm1002_vm0, %v3082_v25  ;;  %2893 = vmatprep.mubr.msk.bf16.mxu0 %vm1002_vm0, %v3264_v28 }
  0xc8   :  { %2911 = vmatprep.mubr.msk.bf16.mxu1 %vm1002_vm0, %v3264_v28  ;;  %v1840_v33 = vrot.slane %v3758_v17, %v1839_v24 }
  0xcd   :  { %2880 = vmatpush3.bf16.xpose.msra.mxu0 %v1313_v29  ;;  %v1852_v29 = vrot.slane %v3758_v17, %v1851_v19 }
  0xce   :  { %2898 = vmatpush3.bf16.xpose.msra.mxu1 %v1361_v31  ;;  %2963 = vmatprep.subr.msk.bf16.mxu0 %vm1002_vm0, %v3085_v30  ;;  %v1848_v30 = vrot.slane %v3758_v17, %v1847_v21 }
  0xcf   :  { %2971 = vmatprep.subr.msk.bf16.mxu1 %vm1002_vm0, %v3086_v32  ;;  %v2023_v32 = vld [vmem:[%s3910_s3 + $0xd0] sm:$0xff] }
  0xd5   :  { %2882 = vmatpush3.bf16.xpose.msra.mxu0 %v1310_v35  ;;  %v2016_v35 = vld [vmem:[%s3910_s3 + $0x98] sm:$0xff] }
  0xd6   :  { %2900 = vmatpush3.bf16.xpose.msra.mxu1 %v1358_v37  ;;  %2964 = vmatprep.subr.msk.bf16.mxu0 %vm1002_vm0, %v3089_v36  ;;  %v2024_v36 = vld [vmem:[%s3910_s3 + $0xd8] sm:$0xff] }
  0xd7   :  { %2972 = vmatprep.subr.msk.bf16.mxu1 %vm1002_vm0, %v3090_v38  ;;  %v2753_v4 = vcombine.low %v2016_v35, %v2024_v36 }
  0xdd   :  { %2884 = vmatpush3.bf16.xpose.msra.mxu0 %v1307_v41 }
  0xde   :  { %2902 = vmatpush3.bf16.xpose.msra.mxu1 %v1355_v43  ;;  %2965 = vmatprep.subr.msk.bf16.mxu0 %vm1002_vm0, %v3093_v42  ;;  %v2733_v43 = vcombine.low %v1998_v13, %v2006_v14  ;;  %v2737_v14 = vcombine.low %v2000_v0, %v2008_v1 }
  0xdf   :  { %2973 = vmatprep.subr.msk.bf16.mxu1 %vm1002_vm0, %v3094_v44 }
  0xe5   :  { %2886 = vmatpush3.bf16.xpose.msra.mxu0 %v1304_v47 }
  0xe6   :  { %2904 = vmatpush3.bf16.xpose.msra.mxu1 %v1352_v49  ;;  %2966 = vmatprep.subr.msk.bf16.mxu0 %vm1002_vm0, %v3097_v48  ;;  %v2754_v49 = vcombine.high %v2016_v35, %v2024_v36 }
  0xe7   :  { %2974 = vmatprep.subr.msk.bf16.mxu1 %vm1002_vm0, %v3098_v50 }
  0xed   :  { %2888 = vmatpush3.bf16.xpose.msra.mxu0 %v1301_v53 }
  0xee   :  { %2906 = vmatpush3.bf16.xpose.msra.mxu1 %v1349_v55  ;;  %2967 = vmatprep.subr.msk.bf16.mxu0 %vm1002_vm0, %v3101_v54 }
  0xef   :  { %2975 = vmatprep.subr.msk.bf16.mxu1 %vm1002_vm0, %v3102_v56 }
  0xf5   :  { %2890 = vmatpush3.bf16.xpose.msra.mxu0 %v1298_v59 }
  0xf6   :  { %2908 = vmatpush3.bf16.xpose.msra.mxu1 %v1346_v61  ;;  %2968 = vmatprep.subr.msk.bf16.mxu0 %vm1002_vm0, %v3105_v60  ;;  %v1999_v60 = vld [vmem:[%s3910_s3 + $0x10] sm:$0xff] }
  0xf7   :  { %2976 = vmatprep.subr.msk.bf16.mxu1 %vm1002_vm0, %v3106_v62  ;;  %v2007_v61 = vld [vmem:[%s3910_s3 + $0x50] sm:$0xff] }
  0xf8   :  { %v2736_v5 = vcombine.high %v1999_v60, %v2007_v61  ;;  %v2735_v13 = vcombine.low %v1999_v60, %v2007_v61  ;;  %v2757_v61 = vcombine.low %v2018_v11, %v2026_v12 }
  0xfd   :  { %2892 = vmatpush3.bf16.xpose.msra.mxu0 %v1295_v6 }
  0xfe   :  { %2910 = vmatpush3.bf16.xpose.msra.mxu1 %v1343_v8  ;;  %2208 = vmatprep.subr.bf16.mxu0 %v2748_v7  ;;  %v2738_v7 = vcombine.high %v2000_v0, %v2008_v1  ;;  %v2017_v8 = vld [vmem:[%s3910_s3 + $0xa0] sm:$0xff]  ;;  %v2019_v1 = vld [vmem:[%s3910_s3 + $0xb0] sm:$0xff] }
  0xff   :  { %2249 = vmatprep.subr.bf16.mxu1 %v2750_v9  ;;  %v2025_v9 = vld [vmem:[%s3910_s3 + $0xe0] sm:$0xff] }
 0x104   :  { %v1424_v23 = vpop.f32.mrf.mxu0  ;;  %2894 = vmatmul.mubr.msk.bf16.vlgmr.msra.gmra.mxu0 %vm1002_vm0, %v3264_v28 }
 0x105   :  { %v1467_v25 = vpop.f32.mrf.mxu1  ;;  %2912 = vmatmul.mubr.msk.bf16.vlgmr.msra.gmra.mxu1 %vm1002_vm0, %v3264_v28  ;;  %2209 = vmatpush1.bf16.xpose.msra.mxu0 %v2747_v15  ;;  %v2015_v28 = vld [vmem:[%s3910_s3 + $0x90] sm:$0xff]  ;;  %v1917_v50 = vadd.f32 %v1840_v33, %v1424_v23  ;;  %v2756_v15 = vcombine.high %v2017_v8, %v2025_v9  ;;  %v1855_v23 = vsub.s32 4, %v3740_v10 }
 0x106   :  { %2250 = vmatpush1.bf16.xpose.msra.mxu1 %v2749_v18  ;;  %v1426_v27 = vpop.f32.mrf.mxu0  ;;  %2210 = vmatprep.subr.bf16.mxu0 %v2732_v20  ;;  %v2752_v44 = vcombine.high %v2015_v28, %v2023_v32  ;;  %v1919_v45 = vadd.f32 %v1848_v30, %v1467_v25  ;;  %v2751_v2 = vcombine.low %v2015_v28, %v2023_v32  ;;  %v1863_v20 = vsub.s32 6, %v3740_v10 }
 0x107   :  { %v1469_v31 = vpop.f32.mrf.mxu1  ;;  %2251 = vmatprep.subr.bf16.mxu1 %v2734_v22  ;;  %v1918_v37 = vadd.f32 %v1844_v26, %v1426_v27  ;;  %v1949_v62 = vmax.f32 %v1917_v50, 0.0  ;;  %v2758_v18 = vcombine.high %v2018_v11, %v2026_v12  ;;  %v1859_v22 = vsub.s32 5, %v3740_v10 }
 0x108   :  { %v1428_v34 = vpop.f32.mrf.mxu0  ;;  %v1920_v40 = vadd.f32 %v1852_v29, %v1469_v31  ;;  %v1951_v57 = vmax.f32 %v1919_v45, 0.0  ;;  %v1867_v25 = vsub.s32 7, %v3740_v10  ;;  %v1856_v31 = vrot.slane %v3758_v17, %v1855_v23 }
 0x109   :  { %v1471_v38 = vpop.f32.mrf.mxu1  ;;  %v1933_v41 = vadd.f32 %v1840_v33, %v1428_v34  ;;  %v1950_v52 = vmax.f32 %v1918_v37, 0.0 }
 0x10a   :  { %v1430_v42 = vpop.f32.mrf.mxu0  ;;  %v1935_v46 = vadd.f32 %v1848_v30, %v1471_v38  ;;  %v1952_v54 = vmax.f32 %v1920_v40, 0.0  ;;  %v1860_v30 = vrot.slane %v3758_v17, %v1859_v22  ;;  %v1868_v32 = vrot.slane %v3758_v17, %v1867_v25 }
 0x10b   :  { %v1934_v47 = vadd.f32 %v1844_v26, %v1430_v42  ;;  %v1473_v48 = vpop.f32.mrf.mxu1  ;;  %v1965_v55 = vmax.f32 %v1933_v41, 0.0 }
 0x10c   :  { %v1936_v51 = vadd.f32 %v1852_v29, %v1473_v48  ;;  %v1967_v58 = vmax.f32 %v1935_v46, 0.0  ;;  %v1864_v29 = vrot.slane %v3758_v17, %v1863_v20  ;;  %v2001_v17 = vld [vmem:[%s3910_s3 + $0x20] sm:$0xff] }
 0x10d   :  { %v1966_v53 = vmax.f32 %v1934_v47, 0.0  ;;  %2211 = vmatpush1.bf16.xpose.msra.mxu0 %v2731_v39  ;;  %v1981_v3 = vpack.c.bf16 %v1965_v55, %v1949_v62  ;;  %v2002_v55 = vld [vmem:[%s3910_s3 + $0x28] sm:$0xff] }
 0x10e   :  { %v1968_v56 = vmax.f32 %v1936_v51, 0.0  ;;  %2252 = vmatpush1.bf16.xpose.msra.mxu1 %v2733_v43  ;;  %2290 = vmatprep.subr.bf16.mxu0 %v2752_v44  ;;  %v1983_v6 = vpack.c.bf16 %v1967_v58, %v1951_v57  ;;  %v2009_v51 = vld [vmem:[%s3910_s3 + $0x60] sm:$0xff]  ;;  %v2755_v58 = vcombine.low %v2017_v8, %v2025_v9  ;;  %v1834_v9 = vld [vmem:[%s3909_s2 + $0x8] sm:$0xff] }
 0x10f   :  { %v1982_v59 = vpack.c.bf16 %v1966_v53, %v1950_v52  ;;  %2331 = vmatprep.subr.bf16.mxu1 %v2754_v49  ;;  %v2740_v62 = vcombine.high %v2001_v17, %v2009_v51 }
 0x110   :  { %v1984_v63 = vpack.c.bf16 %v1968_v56, %v1952_v54  ;;  %v2010_v56 = vld [vmem:[%s3910_s3 + $0x68] sm:$0xff] }
 0x111   :  { %2228 = vmatprep.mubr.bf16.mxu0 %v1982_v59  ;;  %v2742_v0 = vcombine.high %v2002_v55, %v2010_v56 }
 0x112   :  { %2269 = vmatprep.mubr.bf16.mxu1 %v1984_v63 }
 0x114   :  { %2229 = vmatmul.mubr.bf16.vlgmr.msra.gmra.mxu0 %v1981_v3  ;;  %v2020_v3 = vld [vmem:[%s3910_s3 + $0xb8] sm:$0xff] }
 0x115   :  { %2270 = vmatmul.mubr.bf16.vlgmr.msra.gmra.mxu1 %v1983_v6  ;;  %2291 = vmatpush1.bf16.xpose.msra.mxu0 %v2751_v2  ;;  %v2027_v2 = vld [vmem:[%s3910_s3 + $0xf0] sm:$0xff]  ;;  %v2741_v6 = vcombine.low %v2002_v55, %v2010_v56 }
 0x116   :  { %2332 = vmatpush1.bf16.xpose.msra.mxu1 %v2753_v4  ;;  %2292 = vmatprep.subr.bf16.mxu0 %v2736_v5  ;;  %v2028_v4 = vld [vmem:[%s3910_s3 + $0xf8] sm:$0xff]  ;;  %v2739_v5 = vcombine.low %v2001_v17, %v2009_v51 }
 0x117   :  { %2333 = vmatprep.subr.bf16.mxu1 %v2738_v7  ;;  %v2760_v7 = vcombine.high %v2019_v1, %v2027_v2  ;;  %v2762_v8 = vcombine.high %v2020_v3, %v2028_v4  ;;  %v2761_v51 = vcombine.low %v2020_v3, %v2028_v4 }
 0x11d   :  { %2293 = vmatpush1.bf16.xpose.msra.mxu0 %v2735_v13  ;;  %v1880_v13 = vrot.slane %v1834_v9, %v1847_v21 }
 0x11e   :  { %2334 = vmatpush1.bf16.xpose.msra.mxu1 %v2737_v14  ;;  %2372 = vmatprep.subr.bf16.mxu0 %v2756_v15  ;;  %v1876_v14 = vrot.slane %v1834_v9, %v1843_v16  ;;  %v1872_v15 = vrot.slane %v1834_v9, %v1839_v24 }
 0x11f   :  { %2413 = vmatprep.subr.bf16.mxu1 %v2758_v18 }
 0x144   :  { %v1510_v26 = vpop.f32.mrf.mxu0 }
 0x145   :  { %v1553_v27 = vpop.f32.mrf.mxu1  ;;  %v1921_v39 = vadd.f32 %v1856_v31, %v1510_v26  ;;  %v1884_v26 = vrot.slane %v1834_v9, %v1851_v19  ;;  %v2003_v19 = vld [vmem:[%s3910_s3 + $0x30] sm:$0xff] }
 0x146   :  { %v1512_v28 = vpop.f32.mrf.mxu0  ;;  %v1923_v35 = vadd.f32 %v1864_v29, %v1553_v27 }
 0x147   :  { %v1555_v33 = vpop.f32.mrf.mxu1  ;;  %v1922_v36 = vadd.f32 %v1860_v30, %v1512_v28  ;;  %v1953_v52 = vmax.f32 %v1921_v39, 0.0 }
 0x148   :  { %v1514_v34 = vpop.f32.mrf.mxu0  ;;  %v1924_v40 = vadd.f32 %v1868_v32, %v1555_v33  ;;  %v1955_v47 = vmax.f32 %v1923_v35, 0.0 }
 0x149   :  { %v1937_v37 = vadd.f32 %v1856_v31, %v1514_v34  ;;  %v1557_v38 = vpop.f32.mrf.mxu1  ;;  %v1954_v48 = vmax.f32 %v1922_v36, 0.0 }
 0x14a   :  { %v1939_v41 = vadd.f32 %v1864_v29, %v1557_v38  ;;  %v1516_v42 = vpop.f32.mrf.mxu0  ;;  %v1956_v53 = vmax.f32 %v1924_v40, 0.0 }
 0x14b   :  { %v1938_v43 = vadd.f32 %v1860_v30, %v1516_v42  ;;  %v1559_v44 = vpop.f32.mrf.mxu1  ;;  %v1969_v45 = vmax.f32 %v1937_v37, 0.0  ;;  %v2011_v42 = vld [vmem:[%s3910_s3 + $0x70] sm:$0xff] }
 0x14c   :  { %v1940_v46 = vadd.f32 %v1868_v32, %v1559_v44  ;;  %v1971_v49 = vmax.f32 %v1939_v41, 0.0  ;;  %v2743_v55 = vcombine.low %v2003_v19, %v2011_v42 }
 0x14d   :  { %v1970_v50 = vmax.f32 %v1938_v43, 0.0  ;;  %v1985_v59 = vpack.c.bf16 %v1969_v45, %v1953_v52  ;;  %v2744_v52 = vcombine.high %v2003_v19, %v2011_v42 }
 0x14e   :  { %v1972_v54 = vmax.f32 %v1940_v46, 0.0  ;;  %v1987_v63 = vpack.c.bf16 %v1971_v49, %v1955_v47  ;;  %v2004_v46 = vld [vmem:[%s3910_s3 + $0x38] sm:$0xff]  ;;  %v2759_v49 = vcombine.low %v2019_v1, %v2027_v2 }
 0x14f   :  { %v1986_v57 = vpack.c.bf16 %v1970_v50, %v1954_v48  ;;  %v2012_v47 = vld [vmem:[%s3910_s3 + $0x78] sm:$0xff] }
 0x150   :  { %v1988_v60 = vpack.c.bf16 %v1972_v54, %v1956_v53  ;;  %v2746_v54 = vcombine.high %v2004_v46, %v2012_v47  ;;  %v2745_v56 = vcombine.low %v2004_v46, %v2012_v47 }
 0x151   :  { %2310 = vmatprep.mubr.bf16.mxu0 %v1986_v57 }
 0x152   :  { %2351 = vmatprep.mubr.bf16.mxu1 %v1988_v60  ;;  %2311 = vmatmul.mubr.bf16.vlgmr.msra.gmra.mxu0 %v1985_v59  ;;  %v1892_v59 = vrot.slane %v1834_v9, %v1859_v22  ;;  %v1888_v60 = vrot.slane %v1834_v9, %v1855_v23 }
 0x153   :  { %2352 = vmatmul.mubr.bf16.vlgmr.msra.gmra.mxu1 %v1987_v63  ;;  %2373 = vmatpush1.bf16.xpose.msra.mxu0 %v2755_v58  ;;  %v1896_v63 = vrot.slane %v1834_v9, %v1863_v20 }
 0x154   :  { %2414 = vmatpush1.bf16.xpose.msra.mxu1 %v2757_v61  ;;  %2374 = vmatprep.subr.bf16.mxu0 %v2740_v62  ;;  %v1900_v62 = vrot.slane %v1834_v9, %v1867_v25 }
 0x155   :  { %2415 = vmatprep.subr.bf16.mxu1 %v2742_v0 }
 0x15b   :  { %2375 = vmatpush1.bf16.xpose.msra.mxu0 %v2739_v5 }
 0x15c   :  { %2416 = vmatpush1.bf16.xpose.msra.mxu1 %v2741_v6  ;;  %2454 = vmatprep.subr.bf16.mxu0 %v2760_v7 }
 0x15d   :  { %2495 = vmatprep.subr.bf16.mxu1 %v2762_v8 }
 0x184   :  { %v1596_v11 = vpop.f32.mrf.mxu0 }
 0x185   :  { %v1639_v12 = vpop.f32.mrf.mxu1  ;;  %v1925_v33 = vadd.f32 %v1872_v15, %v1596_v11 }
 0x186   :  { %v1598_v18 = vpop.f32.mrf.mxu0  ;;  %v1927_v30 = vadd.f32 %v1880_v13, %v1639_v12 }
 0x187   :  { %v1641_v27 = vpop.f32.mrf.mxu1  ;;  %v1926_v31 = vadd.f32 %v1876_v14, %v1598_v18  ;;  %v1957_v43 = vmax.f32 %v1925_v33, 0.0 }
 0x188   :  { %v1600_v29 = vpop.f32.mrf.mxu0  ;;  %v1928_v34 = vadd.f32 %v1884_v26, %v1641_v27  ;;  %v1959_v39 = vmax.f32 %v1927_v30, 0.0 }
 0x189   :  { %v1941_v28 = vadd.f32 %v1872_v15, %v1600_v29  ;;  %v1643_v32 = vpop.f32.mrf.mxu1  ;;  %v1958_v24 = vmax.f32 %v1926_v31, 0.0  ;;  %v2730_v31 = vld [vmem:[%s3911_s4] ss:$0 sm:$0xff] }
 0x18a   :  { %v1943_v35 = vadd.f32 %v1880_v13, %v1643_v32  ;;  %v1602_v21 = vpop.f32.mrf.mxu0  ;;  %v1960_v44 = vmax.f32 %v1928_v34, 0.0 }
 0x18b   :  { %v1942_v36 = vadd.f32 %v1876_v14, %v1602_v21  ;;  %v1645_v37 = vpop.f32.mrf.mxu1  ;;  %v1973_v16 = vmax.f32 %v1941_v28, 0.0 }
 0x18c   :  { %v1944_v38 = vadd.f32 %v1884_v26, %v1645_v37  ;;  %v1975_v40 = vmax.f32 %v1943_v35, 0.0 }
 0x18d   :  { %v1974_v41 = vmax.f32 %v1942_v36, 0.0  ;;  %v1989_v50 = vpack.c.bf16 %v1973_v16, %v1957_v43 }
 0x18e   :  { %v1976_v45 = vmax.f32 %v1944_v38, 0.0  ;;  %v1991_v53 = vpack.c.bf16 %v1975_v40, %v1959_v39 }
 0x18f   :  { %v1990_v48 = vpack.c.bf16 %v1974_v41, %v1958_v24 }
 0x190   :  { %v1992_v17 = vpack.c.bf16 %v1976_v45, %v1960_v44 }
 0x191   :  { %2392 = vmatprep.mubr.bf16.mxu0 %v1990_v48 }
 0x192   :  { %2433 = vmatprep.mubr.bf16.mxu1 %v1992_v17  ;;  %2393 = vmatmul.mubr.bf16.vlgmr.msra.gmra.mxu0 %v1989_v50 }
 0x193   :  { %2434 = vmatmul.mubr.bf16.vlgmr.msra.gmra.mxu1 %v1991_v53  ;;  %2455 = vmatpush1.bf16.xpose.msra.mxu0 %v2759_v49 }
 0x194   :  { %2496 = vmatpush1.bf16.xpose.msra.mxu1 %v2761_v51  ;;  %2456 = vmatprep.subr.bf16.mxu0 %v2744_v52 }
 0x195   :  { %2497 = vmatprep.subr.bf16.mxu1 %v2746_v54 }
 0x19b   :  { %2457 = vmatpush1.bf16.xpose.msra.mxu0 %v2743_v55 }
 0x19c   :  { %2498 = vmatpush1.bf16.xpose.msra.mxu1 %v2745_v56 }
 0x1c4   :  { %v1682_v57 = vpop.f32.mrf.mxu0 }
 0x1c5   :  { %v1725_v58 = vpop.f32.mrf.mxu1  ;;  %v1929_v5 = vadd.f32 %v1888_v60, %v1682_v57 }
 0x1c6   :  { %v1684_v61 = vpop.f32.mrf.mxu0  ;;  %v1931_v22 = vadd.f32 %v1896_v63, %v1725_v58 }
 0x1c7   :  { %v1727_v0 = vpop.f32.mrf.mxu1  ;;  %v1930_v2 = vadd.f32 %v1892_v59, %v1684_v61  ;;  %v1961_v18 = vmax.f32 %v1929_v5, 0.0 }
 0x1c8   :  { %v1686_v1 = vpop.f32.mrf.mxu0  ;;  %v1932_v6 = vadd.f32 %v1900_v62, %v1727_v0  ;;  %v1963_v9 = vmax.f32 %v1931_v22, 0.0 }
 0x1c9   :  { %v1945_v3 = vadd.f32 %v1888_v60, %v1686_v1  ;;  %v1729_v4 = vpop.f32.mrf.mxu1  ;;  %v1962_v14 = vmax.f32 %v1930_v2, 0.0 }
 0x1ca   :  { %v1947_v7 = vadd.f32 %v1896_v63, %v1729_v4  ;;  %v1688_v8 = vpop.f32.mrf.mxu0  ;;  %v1964_v10 = vmax.f32 %v1932_v6, 0.0 }
 0x1cb   :  { %v1946_v11 = vadd.f32 %v1892_v59, %v1688_v8  ;;  %v1731_v12 = vpop.f32.mrf.mxu1  ;;  %v1977_v23 = vmax.f32 %v1945_v3, 0.0  ;;  %v2766_v59 = vld [vmem:[%s3912_s5] sm:$0xff]  }
 0x1cc   :  { %v1948_v13 = vadd.f32 %v1900_v62, %v1731_v12  ;;  %v1979_v15 = vmax.f32 %v1947_v7, 0.0  ;;  %v2767_v1 = vunpack.c.l.bf16 %v2766_v59 }
 0x1cd   :  { %v1978_v25 = vmax.f32 %v1946_v11, 0.0  ;;  %v1993_v27 = vpack.c.bf16 %v1977_v23, %v1961_v18  ;;  %v2768_v11 = vunpack.c.h.bf16 %v2766_v59 }
 0x1ce   :  { %v1980_v20 = vmax.f32 %v1948_v13, 0.0  ;;  %v1995_v30 = vpack.c.bf16 %v1979_v15, %v1963_v9 }
 0x1cf   :  { %v1994_v26 = vpack.c.bf16 %v1978_v25, %v1962_v14 }
 0x1d0   :  { %v1996_v29 = vpack.c.bf16 %v1980_v20, %v1964_v10 }
 0x1d1   :  { %2474 = vmatprep.mubr.bf16.mxu0 %v1994_v26 }
 0x1d2   :  { %2515 = vmatprep.mubr.bf16.mxu1 %v1996_v29  ;;  %2475 = vmatmul.mubr.bf16.vlgmr.msra.gmra.mxu0 %v1993_v27 }
 0x1d3   :  { %2516 = vmatmul.mubr.bf16.vlgmr.msra.gmra.mxu1 %v1995_v30 }
 0x1d4   :  { %v2230_v28 = vpop.f32.mrf.mxu0 }
 0x1d5   :  { %v2231_v32 = vadd.f32 %v2730_v31, %v2230_v28  ;;  %v2271_v33 = vpop.f32.mrf.mxu1 }
 0x1d6   :  { %v2232_v34 = vpop.f32.mrf.mxu0 }
 0x1d7   :  { %v2272_v35 = vadd.f32 %v2271_v33, %v2231_v32  ;;  %v2273_v21 = vpop.f32.mrf.mxu1 }
 0x1d8   :  { %v2233_v36 = vpop.f32.mrf.mxu0 }
 0x1d9   :  { %v2234_v37 = vadd.f32 %v2730_v31, %v2233_v36  ;;  %v2274_v16 = vpop.f32.mrf.mxu1 }
 0x1da   :  { %v2235_v38 = vpop.f32.mrf.mxu0 }
 0x1db   :  { %v2275_v39 = vadd.f32 %v2274_v16, %v2234_v37  ;;  %v2276_v24 = vpop.f32.mrf.mxu1  ;;  %v2763_v16 = vld [vmem:[%s3913_s6] ss:$0 sm:$0xff] }
 0x212   :  { %v2312_v40 = vpop.f32.mrf.mxu0 }
 0x213   :  { %v2313_v41 = vadd.f32 %v2312_v40, %v2272_v35  ;;  %v2353_v19 = vpop.f32.mrf.mxu1 }
 0x214   :  { %v2314_v42 = vpop.f32.mrf.mxu0 }
 0x215   :  { %v2354_v43 = vadd.f32 %v2353_v19, %v2313_v41  ;;  %v2355_v44 = vpop.f32.mrf.mxu1 }
 0x216   :  { %v2315_v45 = vpop.f32.mrf.mxu0 }
 0x217   :  { %v2316_v46 = vadd.f32 %v2315_v45, %v2275_v39  ;;  %v2356_v47 = vpop.f32.mrf.mxu1  ;;  %v2764_v39 = vld [vmem:[%s3914_s7] ss:$0 sm:$0xff] }
 0x218   :  { %v2317_v48 = vpop.f32.mrf.mxu0 }
 0x219   :  { %v2357_v49 = vadd.f32 %v2356_v47, %v2316_v46  ;;  %v2358_v50 = vpop.f32.mrf.mxu1 }
 0x252   :  { %v2394_v17 = vpop.f32.mrf.mxu0 }
 0x253   :  { %v2435_v51 = vpop.f32.mrf.mxu1  ;;  %v2395_v58 = vadd.f32 %v2394_v17, %v2354_v43 }
 0x254   :  { %v2396_v52 = vpop.f32.mrf.mxu0 }
 0x255   :  { %v2437_v53 = vpop.f32.mrf.mxu1  ;;  %v2436_v60 = vadd.f32 %v2435_v51, %v2395_v58 }
 0x256   :  { %v2397_v54 = vpop.f32.mrf.mxu0 }
 0x257   :  { %v2438_v55 = vpop.f32.mrf.mxu1  ;;  %v2398_v61 = vadd.f32 %v2397_v54, %v2357_v49 }
 0x258   :  { %v2399_v56 = vpop.f32.mrf.mxu0 }
 0x259   :  { %v2440_v57 = vpop.f32.mrf.mxu1  ;;  %v2439_v3 = vadd.f32 %v2438_v55, %v2398_v61 }
 0x292   :  { %v2476_v62 = vpop.f32.mrf.mxu0 }
 0x293   :  { %v2477_v63 = vadd.f32 %v2476_v62, %v2436_v60  ;;  %v2517_v0 = vpop.f32.mrf.mxu1 }
 0x294   :  { %v2478_v2 = vpop.f32.mrf.mxu0 }
 0x295   :  { %v2518_v4 = vadd.f32 %v2517_v0, %v2477_v63  ;;  %v2519_v5 = vpop.f32.mrf.mxu1 }
 0x296   :  { %v2479_v6 = vpop.f32.mrf.mxu0 }
 0x297   :  { %v2480_v7 = vadd.f32 %v2479_v6, %v2439_v3  ;;  %v2520_v8 = vpop.f32.mrf.mxu1  ;;  %v2528_v22 = vadd.f32 %v2767_v1, %v2518_v4 }
 0x298   :  { %v2481_v12 = vpop.f32.mrf.mxu0 }
 0x299   :  { %v2521_v23 = vadd.f32 %v2520_v8, %v2480_v7  ;;  %v2522_v13 = vpop.f32.mrf.mxu1  ;;  %v2530_v14 = vsel %vm1002_vm0, %v2528_v22, 0.0 }
 0x29a   :  { %2531 = vadd.xlane.f32.xlu0 %v2530_v14 }
 0x29b   :  { %v2529_v15 = vadd.f32 %v2768_v11, %v2521_v23 }
 0x29d   :  { %v2533_v25 = vsel %vm1002_vm0, %v2529_v15, 0.0 }
 0x29e   :  { %2534 = vadd.xlane.f32.xlu0 %v2533_v25 }
 0x323   :  { %v2532_v18 = vpop.xlane.xlu0 %2531 }
 0x324   :  { %v2537_v10 = vmul.f32 0.03125, %v2532_v18 }
 0x326   :  { %v2539_v20 = vsub.f32 %v2528_v22, %v2537_v10 }
 0x327   :  { %v2535_v9 = vpop.xlane.xlu0 %2534 }
 0x328   :  { %v2538_v26 = vmul.f32 0.03125, %v2535_v9  ;;  %v2541_v27 = vmul.f32 %v2539_v20, %v2539_v20 }
 0x32a   :  { %v2540_v29 = vsub.f32 %v2529_v15, %v2538_v26  ;;  %v2543_v30 = vsel %vm1002_vm0, %v2541_v27, 0.0 }
 0x32b   :  { %2544 = vadd.xlane.f32.xlu1 %v2543_v30 }
 0x32c   :  { %v2542_v31 = vmul.f32 %v2540_v29, %v2540_v29 }
 0x32e   :  { %v2546_v28 = vsel %vm1002_vm0, %v2542_v31, 0.0 }
 0x32f   :  { %2547 = vadd.xlane.f32.xlu1 %v2546_v28 }
 0x3b4   :  { %v2545_v32 = vpop.xlane.xlu1 %2544 }
 0x3b5   :  { %v2549_v33 = vmul.f32 0.03125, %v2545_v32 }
 0x3b7   :  { %v2551_v34 = vadd.f32 1e-05, %v2549_v33 }
 0x3b8   :  { %v2548_v35 = vpop.xlane.xlu1 %2547 }
 0x3b9   :  { %3109 = vrsqrt.f32 %v2551_v34  ;;  %v2550_v21 = vmul.f32 0.03125, %v2548_v35 }
 0x3bb   :  { %v2552_v36 = vadd.f32 1e-05, %v2550_v21 }
 0x3bd   :  { %3111 = vrsqrt.f32 %v2552_v36 }
 0x3c6   :  { %v3110_v37 = vpop.eup %3109 }
 0x3c7   :  { %v2555_v38 = vmul.f32 %v3110_v37, %v2539_v20 }
 0x3c9   :  { %v2564_v24 = vmul.f32 %v2763_v16, %v2555_v38 }
 0x3ca   :  { %v3112_v40 = vpop.eup %3111 }
 0x3cb   :  { %v2556_v41 = vmul.f32 %v3112_v40, %v2540_v29  ;;  %v2573_v19 = vadd.f32 %v2764_v39, %v2564_v24 }
 0x3cd   :  { %v2565_v42 = vmul.f32 %v2763_v16, %v2556_v41  ;;  %2575 = vst.msk [vmem:[#allocation3] sm:$0xff] %vm1002_vm0, %v2573_v19 }
 0x3cf   :  { %v2574_v43 = vadd.f32 %v2764_v39, %v2565_v42 }
 0x3d1   :  { %2576 = vst.msk [vmem:[#allocation3 + $0x8] sm:$0xff] %vm1002_vm0, %v2574_v43 }
 0x3d2   :  { %3124 = shalt.err (!%p3121_p4)
}
 0x3d3   :  { %s3136_s6 = smov 128   ;;  %s3137_s7 = smov 8  }
 0x3d4   :  { %2588 = dma.vmem_to_hbm [thread:$0]  %s2583_s12, 256, %s3915_s8, [#allocation4], %s3136_s6, %s3136_s6, %s3137_s7  }
 0x3d5   :  { %3133 = dma.done.wait [#allocation4], 256  }
 0x3d6   :  { %3134 = vsyncadd [#allocation4], 4294967040 }
 0x3d7   :  { %2592 = vsyncpa [#allocation4], 1 }

</bundles_post_ra>
